<compile_context>
chip_gen: v7x
topology: tpu7x:2x2x1
jax: 0.10.0
libtpu: 0.0.40
codegen_flags: <defaults>
</compile_context>

<pallas_src>
import jax
import jax.numpy as jnp
from jax import lax
from jax.experimental import pallas as pl
from jax.experimental.pallas import tpu as pltpu


# ---------------------------------------------------------------------------
# Weight folding helpers (pure JAX, traced once under jit; tiny matrices).
# ---------------------------------------------------------------------------
def _build_up_mats(wt, w1_pixels):
    """ConvTranspose2d(k=2,s=2) weights -> 2 banded matmul operands.

    wt: PyTorch layout (Cin, Cout, 2, 2).
    Returns (2, W1*Cin, W2*Cout) with
        M[di][(w*Cin+ci), (w2*Cout+co)] = wt[ci, co, di, dj] if w2 == 2*w+dj.
    Then  up_rows(di) = x1_2d @ M[di]  yields rows h2 = 2*h+di of the
    upsampled image directly in lane-dense (W2*Cout) layout, so no sub-pixel
    interleave/transpose ever touches HBM.
    """
    cin, cout, _, _ = wt.shape
    W1 = w1_pixels
    W2 = 2 * W1
    w = jnp.arange(W1)[:, None]
    w2 = jnp.arange(W2)[None, :]
    m5 = jnp.zeros((2, W1, cin, W2, cout), wt.dtype)
    for dj in range(2):
        mask = (w2 == 2 * w + dj).astype(wt.dtype)            # (W1, W2)
        wdi = jnp.transpose(wt[:, :, :, dj], (2, 0, 1))       # (2, Cin, Cout)
        m5 = m5 + mask[None, :, None, :, None] * wdi[:, None, :, None, :]
    return m5.reshape(2, W1 * cin, W2 * cout)


def _build_banded(w_hwio, W):
    """3x3 'same' conv weights -> 3 banded matmul operands (one per kh).

    w_hwio: (3, 3, Cin_g, Cout).
    Returns (3, (W+2)*Cin_g, W*Cout) with
        B[kh][(wi*Cin_g+ci), (w*Cout+co)] = w_hwio[kh, kw, ci, co], wi = w+kw.
    A 'same' conv becomes  sum_kh  xpad[kh:kh+H, :] @ B[kh]  -- only cheap
    kh row-band slices, K = 3*Cin_g per MXU push, lane-dense output.
    """
    _, _, cin_g, cout = w_hwio.shape
    wp = W + 2
    wi = jnp.arange(wp)[:, None]
    wc = jnp.arange(W)[None, :]
    b5 = jnp.zeros((3, wp, cin_g, W, cout), w_hwio.dtype)
    for kw in range(3):
        mask = (wi == wc + kw).astype(w_hwio.dtype)           # (wp, W)
        b5 = b5 + mask[None, :, None, :, None] * w_hwio[:, kw][:, None, :, None, :]
    return b5.reshape(3, wp * cin_g, W * cout)


# ---------------------------------------------------------------------------
# Fused Up.forward : one pallas_call, grid over batch.
# ---------------------------------------------------------------------------
def up_forward(x1_nchw, x2_nchw, params):
    N, Cin, H1, W1 = x1_nchw.shape
    _, Cout, H2, W2 = x2_nchw.shape
    assert H2 == 2 * H1 and W2 == 2 * W1
    L = W2 * Cout                      # lane width of the working images
    Wp = W2 + 2                        # padded pixels per row
    out_dtype = x1_nchw.dtype

    # Boundary layout plumbing (XLA): NCHW -> lane-dense (N, H, W*C) slabs.
    x1_2d = jnp.transpose(x1_nchw, (0, 2, 3, 1)).reshape(N, H1, W1 * Cin)
    x2_2d = jnp.transpose(x2_nchw, (0, 2, 3, 1)).reshape(N, H2, L)

    # Fold all weights into matmul operands (jit-cached, tiny).
    mup = _build_up_mats(params["wt"], W1)                    # (2, W1*Cin, L)
    bt_row = jnp.tile(params["bt"], W2).reshape(1, L)
    w1 = params["w1"]                                         # (3,3,2*Cout,Cout)
    b1a = _build_banded(w1[:, :, :Cout, :], W2)               # x2 channel group
    b1b = _build_banded(w1[:, :, Cout:, :], W2)               # upsample group
    b2 = _build_banded(params["w2"], W2)
    s1r = jnp.tile(params["s1"], W2).reshape(1, L)
    b1r = jnp.tile(params["b1"], W2).reshape(1, L)
    s2r = jnp.tile(params["s2"], W2).reshape(1, L)
    b2r = jnp.tile(params["b2"], W2).reshape(1, L)

    def kernel(x1_ref, x2_ref, mup_ref, btr_ref,
               b1a_ref, b1b_ref, s1_ref, bb1_ref,
               b2_ref, s2_ref, bb2_ref,
               o_ref,
               x2p_ref, upp_ref, midp_ref):
        f32 = jnp.float32
        # Zero padded scratch images; borders stay zero == 'same' padding.
        x2p_ref[...] = jnp.zeros_like(x2p_ref)
        upp_ref[...] = jnp.zeros_like(upp_ref)
        midp_ref[...] = jnp.zeros_like(midp_ref)

        # Skip connection -> its padded slab (rows 1..H2, one pixel = Cout
        # lanes of left padding).
        x2p_ref[1:1 + H2, Cout:Cout + L] = x2_ref[...].astype(f32)

        # ConvTranspose2d(k=2, s=2): one matmul per output-row parity di; the
        # result is already in (W2*Cout) lane layout for rows h2 = 2h + di.
        x1v = x1_ref[...].astype(f32)
        for di in range(2):
            rows = jnp.dot(x1v, mup_ref[di],
                           preferred_element_type=jnp.float32) + btr_ref[...]
            # Interleave rows into the padded slab (unrolled static stores;
            # a single sublane-strided store would also work at scale).
            for h in range(H1):
                r = 1 + 2 * h + di
                upp_ref[r:r + 1, Cout:Cout + L] = rows[h:h + 1, :]

        # conv1 (3x3 'same', no bias) + BN + ReLU.  The channel concat is
        # replaced by summing the two weight-group partial convolutions.
        acc = jnp.zeros((H2, L), jnp.float32)
        for kh in range(3):
            acc = acc + jnp.dot(x2p_ref[kh:kh + H2, :], b1a_ref[kh],
                                preferred_element_type=jnp.float32)
            acc = acc + jnp.dot(upp_ref[kh:kh + H2, :], b1b_ref[kh],
                                preferred_element_type=jnp.float32)
        mid = jnp.maximum(acc * s1_ref[...] + bb1_ref[...], 0.0)
        midp_ref[1:1 + H2, Cout:Cout + L] = mid

        # conv2 (3x3 'same', no bias) + BN + ReLU.
        acc2 = jnp.zeros((H2, L), jnp.float32)
        for kh in range(3):
            acc2 = acc2 + jnp.dot(midp_ref[kh:kh + H2, :], b2_ref[kh],
                                  preferred_element_type=jnp.float32)
        y = jnp.maximum(acc2 * s2_ref[...] + bb2_ref[...], 0.0)
        o_ref[...] = y.astype(o_ref.dtype)

    out2d = pl.pallas_call(
        kernel,
        out_shape=jax.ShapeDtypeStruct((N, H2, L), out_dtype),
        grid=(N,),
        in_specs=[
            pl.BlockSpec((None, H1, W1 * Cin), lambda n: (n, 0, 0)),
            pl.BlockSpec((None, H2, L), lambda n: (n, 0, 0)),
            pl.BlockSpec((2, W1 * Cin, L), lambda n: (0, 0, 0)),
            pl.BlockSpec((1, L), lambda n: (0, 0)),
            pl.BlockSpec((3, Wp * Cout, L), lambda n: (0, 0, 0)),
            pl.BlockSpec((3, Wp * Cout, L), lambda n: (0, 0, 0)),
            pl.BlockSpec((1, L), lambda n: (0, 0)),
            pl.BlockSpec((1, L), lambda n: (0, 0)),
            pl.BlockSpec((3, Wp * Cout, L), lambda n: (0, 0, 0)),
            pl.BlockSpec((1, L), lambda n: (0, 0)),
            pl.BlockSpec((1, L), lambda n: (0, 0)),
        ],
        out_specs=pl.BlockSpec((None, H2, L), lambda n: (n, 0, 0)),
        scratch_shapes=[
            pltpu.VMEM((H2 + 2, Wp * Cout), jnp.float32),   # padded x2
            pltpu.VMEM((H2 + 2, Wp * Cout), jnp.float32),   # padded upsample
            pltpu.VMEM((H2 + 2, Wp * Cout), jnp.float32),   # padded conv1 out
        ],
        compiler_params=pltpu.CompilerParams(
            dimension_semantics=("parallel",)),   # N=2 feeds both v7x cores
    )(x1_2d, x2_2d, mup, bt_row, b1a, b1b, s1r, b1r, b2, s2r, b2r)

    # Free layout plumbing back to NCHW.
    out = out2d.reshape(N, H2, W2, Cout)
    return jnp.transpose(out, (0, 3, 1, 2))


# ---------------------------------------------------------------------------
# Pure-JAX reference (HIGHEST precision ground truth for correctness checking)
# ---------------------------------------------------------------------------
def up_reference(x1_nchw, x2_nchw, params):
    HIGHEST = lax.Precision.HIGHEST
    x1 = jnp.transpose(x1_nchw, (0, 2, 3, 1))
    x2 = jnp.transpose(x2_nchw, (0, 2, 3, 1))
    N, H, W, Cin = x1.shape
    wt = params["wt"]
    Cout = wt.shape[1]
    up = jnp.einsum("nhwc,codq->nhdwqo", x1, wt, precision=HIGHEST)
    up = up.reshape(N, 2 * H, 2 * W, Cout) + params["bt"]

    x = jnp.concatenate([x2, up], axis=-1)

    def cbr(x, w_hwio, s, b):
        y = lax.conv_general_dilated(
            x, w_hwio, (1, 1), "SAME",
            dimension_numbers=("NHWC", "HWIO", "NHWC"), precision=HIGHEST)
        return jnp.maximum(y * s + b, 0.0)

    y = cbr(x, params["w1"], params["s1"], params["b1"])
    y = cbr(y, params["w2"], params["s2"], params["b2"])
    return jnp.transpose(y, (0, 3, 1, 2))


def fold_bn(gamma, beta, mean, var, eps=1e-5):
    scale = gamma / jnp.sqrt(var + eps)
    bias = beta - mean * scale
    return scale, bias


if __name__ == "__main__":
    key = jax.random.PRNGKey(0)
    ks = jax.random.split(key, 16)

    # Up(numInChannels=8, numOutChannels=4); x1 is the low-res decoder feature,
    # x2 is the skip connection at 2x resolution with Cout channels.
    N, Cin, Cout = 2, 8, 4
    H1 = W1 = 8
    H2 = W2 = 16
    C1 = 2 * Cout                     # channels after concat

    x1 = jax.random.normal(ks[0], (N, Cin, H1, W1), jnp.float32)
    x2 = jax.random.normal(ks[1], (N, Cout, H2, W2), jnp.float32)

    # ConvTranspose2d(Cin, Cout, kernel_size=2, stride=2)  weight: (Cin,Cout,2,2)
    wt = 0.2 * jax.random.normal(ks[2], (Cin, Cout, 2, 2), jnp.float32)
    bt = 0.1 * jax.random.normal(ks[3], (Cout,), jnp.float32)

    # DoubleConv(2*Cout, Cout): Conv2d(C1,Cout,3,same,bias=False), BN, ReLU,
    #                           Conv2d(Cout,Cout,3,same,bias=False), BN, ReLU
    w1_pt = 0.15 * jax.random.normal(ks[4], (Cout, C1, 3, 3), jnp.float32)  # OIHW
    g1 = 1.0 + 0.1 * jax.random.normal(ks[5], (Cout,), jnp.float32)
    be1 = 0.1 * jax.random.normal(ks[6], (Cout,), jnp.float32)
    m1 = 0.05 * jax.random.normal(ks[7], (Cout,), jnp.float32)
    v1 = 1.0 + 0.1 * jax.random.uniform(ks[8], (Cout,), jnp.float32)

    w2_pt = 0.15 * jax.random.normal(ks[9], (Cout, Cout, 3, 3), jnp.float32)
    g2 = 1.0 + 0.1 * jax.random.normal(ks[10], (Cout,), jnp.float32)
    be2 = 0.1 * jax.random.normal(ks[11], (Cout,), jnp.float32)
    m2 = 0.05 * jax.random.normal(ks[12], (Cout,), jnp.float32)
    v2 = 1.0 + 0.1 * jax.random.uniform(ks[13], (Cout,), jnp.float32)

    s1, b1 = fold_bn(g1, be1, m1, v1)
    s2, b2 = fold_bn(g2, be2, m2, v2)

    params = {
        "wt": wt, "bt": bt,
        "w1": jnp.transpose(w1_pt, (2, 3, 1, 0)),  # OIHW -> HWIO
        "s1": s1, "b1": b1,
        "w2": jnp.transpose(w2_pt, (2, 3, 1, 0)),
        "s2": s2, "b2": b2,
    }

    out = jax.jit(up_forward)(x1, x2, params)
    out = jax.block_until_ready(out)

    ref = jax.block_until_ready(up_reference(x1, x2, params))

    assert out.shape == (N, Cout, H2, W2), out.shape
    # Tolerance relaxed vs the HIGHEST-precision reference: kernel matmuls run
    # at default MXU precision per the performance guidance.
    assert jnp.allclose(out, ref, atol=5e-2, rtol=5e-2), float(
        jnp.max(jnp.abs(out - ref)))

    print("KERNEL_OK")
</pallas_src>

<mosaic_0001>
module attributes {stable_mosaic.version = 11 : i64} {
  func.func @kernel(%arg0: i32, %arg1: memref<1x8x64xf32, #tpu.memory_space<vmem>>, %arg2: memref<1x16x64xf32, #tpu.memory_space<vmem>>, %arg3: memref<2x64x64xf32, #tpu.memory_space<vmem>>, %arg4: memref<1x64xf32, #tpu.memory_space<vmem>>, %arg5: memref<3x72x64xf32, #tpu.memory_space<vmem>>, %arg6: memref<3x72x64xf32, #tpu.memory_space<vmem>>, %arg7: memref<1x64xf32, #tpu.memory_space<vmem>>, %arg8: memref<1x64xf32, #tpu.memory_space<vmem>>, %arg9: memref<3x72x64xf32, #tpu.memory_space<vmem>>, %arg10: memref<1x64xf32, #tpu.memory_space<vmem>>, %arg11: memref<1x64xf32, #tpu.memory_space<vmem>>, %arg12: memref<1x16x64xf32, #tpu.memory_space<vmem>>, %arg13: memref<18x72xf32, #tpu.memory_space<vmem>>, %arg14: memref<18x72xf32, #tpu.memory_space<vmem>>, %arg15: memref<18x72xf32, #tpu.memory_space<vmem>>) attributes {dimension_semantics = [#tpu.dimension_semantics<parallel>], iteration_bounds = array<i64: 2>, scalar_prefetch = 0 : i64, scratch_operands = 3 : i64, tpu.core_type = #tpu.core_type<tc>, window_params = [{transform_indices = @transform_0, window_bounds = array<i64: 1, 8, 64>}, {transform_indices = @transform_1, window_bounds = array<i64: 1, 16, 64>}, {pipeline_mode = #tpu.pipeline_mode<synchronous>, transform_indices = @transform_2, window_bounds = array<i64: 2, 64, 64>}, {pipeline_mode = #tpu.pipeline_mode<synchronous>, transform_indices = @transform_3, window_bounds = array<i64: 1, 64>}, {pipeline_mode = #tpu.pipeline_mode<synchronous>, transform_indices = @transform_4, window_bounds = array<i64: 3, 72, 64>}, {pipeline_mode = #tpu.pipeline_mode<synchronous>, transform_indices = @transform_5, window_bounds = array<i64: 3, 72, 64>}, {pipeline_mode = #tpu.pipeline_mode<synchronous>, transform_indices = @transform_6, window_bounds = array<i64: 1, 64>}, {pipeline_mode = #tpu.pipeline_mode<synchronous>, transform_indices = @transform_7, window_bounds = array<i64: 1, 64>}, {pipeline_mode = #tpu.pipeline_mode<synchronous>, transform_indices = @transform_8, window_bounds = array<i64: 3, 72, 64>}, {pipeline_mode = #tpu.pipeline_mode<synchronous>, transform_indices = @transform_9, window_bounds = array<i64: 1, 64>}, {pipeline_mode = #tpu.pipeline_mode<synchronous>, transform_indices = @transform_10, window_bounds = array<i64: 1, 64>}, {transform_indices = @transform_11, window_bounds = array<i64: 1, 16, 64>}]} {
    %cst = arith.constant 0.000000e+00 : f32
    %0 = vector.broadcast %cst : f32 to vector<18x72xf32>
    %c0 = arith.constant 0 : index
    %c0_0 = arith.constant 0 : index
    %1 = vector.load %arg13[%c0, %c0_0] : memref<18x72xf32, #tpu.memory_space<vmem>>, vector<18x72xf32>
    tpu.vector_store %arg13[%c0, %c0_0], %0 {strides = array<i32>} : memref<18x72xf32, #tpu.memory_space<vmem>>, vector<18x72xf32>,
    %cst_1 = arith.constant 0.000000e+00 : f32
    %2 = vector.broadcast %cst_1 : f32 to vector<18x72xf32>
    %c0_2 = arith.constant 0 : index
    %c0_3 = arith.constant 0 : index
    %3 = vector.load %arg14[%c0_2, %c0_3] : memref<18x72xf32, #tpu.memory_space<vmem>>, vector<18x72xf32>
    tpu.vector_store %arg14[%c0_2, %c0_3], %2 {strides = array<i32>} : memref<18x72xf32, #tpu.memory_space<vmem>>, vector<18x72xf32>,
    %cst_4 = arith.constant 0.000000e+00 : f32
    %4 = vector.broadcast %cst_4 : f32 to vector<18x72xf32>
    %c0_5 = arith.constant 0 : index
    %c0_6 = arith.constant 0 : index
    %5 = vector.load %arg15[%c0_5, %c0_6] : memref<18x72xf32, #tpu.memory_space<vmem>>, vector<18x72xf32>
    tpu.vector_store %arg15[%c0_5, %c0_6], %4 {strides = array<i32>} : memref<18x72xf32, #tpu.memory_space<vmem>>, vector<18x72xf32>,
    %c0_7 = arith.constant 0 : index
    %c0_8 = arith.constant 0 : index
    %c0_9 = arith.constant 0 : index
    %6 = vector.load %arg2[%c0_7, %c0_8, %c0_9] : memref<1x16x64xf32, #tpu.memory_space<vmem>>, vector<1x16x64xf32>
    %7 = vector.shape_cast %6 : vector<1x16x64xf32> to vector<16x64xf32>
    %c1 = arith.constant 1 : index
    %c4 = arith.constant 4 : index
    %8 = vector.load %arg13[%c1, %c4] : memref<18x72xf32, #tpu.memory_space<vmem>>, vector<16x64xf32>
    tpu.vector_store %arg13[%c1, %c4], %7 {strides = array<i32>} : memref<18x72xf32, #tpu.memory_space<vmem>>, vector<16x64xf32>,
    %c0_10 = arith.constant 0 : index
    %c0_11 = arith.constant 0 : index
    %c0_12 = arith.constant 0 : index
    %9 = vector.load %arg1[%c0_10, %c0_11, %c0_12] : memref<1x8x64xf32, #tpu.memory_space<vmem>>, vector<1x8x64xf32>
    %10 = vector.shape_cast %9 : vector<1x8x64xf32> to vector<8x64xf32>
    %c0_13 = arith.constant 0 : index
    %c0_14 = arith.constant 0 : index
    %c0_15 = arith.constant 0 : index
    %11 = vector.load %arg3[%c0_13, %c0_14, %c0_15] : memref<2x64x64xf32, #tpu.memory_space<vmem>>, vector<1x64x64xf32>
    %12 = vector.shape_cast %11 : vector<1x64x64xf32> to vector<64x64xf32>
    %cst_16 = arith.constant dense<0.000000e+00> : vector<8x64xf32>
    %13 = tpu.matmul %10, %12, %cst_16 {dimension_numbers = #tpu.dot_dimension_numbers<[1], [0], [0], [1], [0, 0, 1, 1], [], []>} : vector<8x64xf32>, vector<64x64xf32>, vector<8x64xf32> -> vector<8x64xf32>
    %c0_17 = arith.constant 0 : index
    %c0_18 = arith.constant 0 : index
    %14 = vector.load %arg4[%c0_17, %c0_18] : memref<1x64xf32, #tpu.memory_space<vmem>>, vector<1x64xf32>
    %15 = vector.broadcast %14 : vector<1x64xf32> to vector<8x64xf32>
    %16 = arith.addf %13, %15 : vector<8x64xf32>
    %17 = vector.extract_strided_slice %16 {offsets = [0, 0], sizes = [1, 64], strides = [1, 1]} : vector<8x64xf32> to vector<1x64xf32>
    %c1_19 = arith.constant 1 : index
    %c4_20 = arith.constant 4 : index
    %18 = vector.load %arg14[%c1_19, %c4_20] : memref<18x72xf32, #tpu.memory_space<vmem>>, vector<1x64xf32>
    tpu.vector_store %arg14[%c1_19, %c4_20], %17 {strides = array<i32>} : memref<18x72xf32, #tpu.memory_space<vmem>>, vector<1x64xf32>,
    %19 = vector.extract_strided_slice %16 {offsets = [1, 0], sizes = [1, 64], strides = [1, 1]} : vector<8x64xf32> to vector<1x64xf32>
    %c3 = arith.constant 3 : index
    %c4_21 = arith.constant 4 : index
    %20 = vector.load %arg14[%c3, %c4_21] : memref<18x72xf32, #tpu.memory_space<vmem>>, vector<1x64xf32>
    tpu.vector_store %arg14[%c3, %c4_21], %19 {strides = array<i32>} : memref<18x72xf32, #tpu.memory_space<vmem>>, vector<1x64xf32>,
    %21 = vector.extract_strided_slice %16 {offsets = [2, 0], sizes = [1, 64], strides = [1, 1]} : vector<8x64xf32> to vector<1x64xf32>
    %c5 = arith.constant 5 : index
    %c4_22 = arith.constant 4 : index
    %22 = vector.load %arg14[%c5, %c4_22] : memref<18x72xf32, #tpu.memory_space<vmem>>, vector<1x64xf32>
    tpu.vector_store %arg14[%c5, %c4_22], %21 {strides = array<i32>} : memref<18x72xf32, #tpu.memory_space<vmem>>, vector<1x64xf32>,
    %23 = vector.extract_strided_slice %16 {offsets = [3, 0], sizes = [1, 64], strides = [1, 1]} : vector<8x64xf32> to vector<1x64xf32>
    %c7 = arith.constant 7 : index
    %c4_23 = arith.constant 4 : index
    %24 = vector.load %arg14[%c7, %c4_23] : memref<18x72xf32, #tpu.memory_space<vmem>>, vector<1x64xf32>
    tpu.vector_store %arg14[%c7, %c4_23], %23 {strides = array<i32>} : memref<18x72xf32, #tpu.memory_space<vmem>>, vector<1x64xf32>,
    %25 = vector.extract_strided_slice %16 {offsets = [4, 0], sizes = [1, 64], strides = [1, 1]} : vector<8x64xf32> to vector<1x64xf32>
    %c9 = arith.constant 9 : index
    %c4_24 = arith.constant 4 : index
    %26 = vector.load %arg14[%c9, %c4_24] : memref<18x72xf32, #tpu.memory_space<vmem>>, vector<1x64xf32>
    tpu.vector_store %arg14[%c9, %c4_24], %25 {strides = array<i32>} : memref<18x72xf32, #tpu.memory_space<vmem>>, vector<1x64xf32>,
    %27 = vector.extract_strided_slice %16 {offsets = [5, 0], sizes = [1, 64], strides = [1, 1]} : vector<8x64xf32> to vector<1x64xf32>
    %c11 = arith.constant 11 : index
    %c4_25 = arith.constant 4 : index
    %28 = vector.load %arg14[%c11, %c4_25] : memref<18x72xf32, #tpu.memory_space<vmem>>, vector<1x64xf32>
    tpu.vector_store %arg14[%c11, %c4_25], %27 {strides = array<i32>} : memref<18x72xf32, #tpu.memory_space<vmem>>, vector<1x64xf32>,
    %29 = vector.extract_strided_slice %16 {offsets = [6, 0], sizes = [1, 64], strides = [1, 1]} : vector<8x64xf32> to vector<1x64xf32>
    %c13 = arith.constant 13 : index
    %c4_26 = arith.constant 4 : index
    %30 = vector.load %arg14[%c13, %c4_26] : memref<18x72xf32, #tpu.memory_space<vmem>>, vector<1x64xf32>
    tpu.vector_store %arg14[%c13, %c4_26], %29 {strides = array<i32>} : memref<18x72xf32, #tpu.memory_space<vmem>>, vector<1x64xf32>,
    %31 = vector.extract_strided_slice %16 {offsets = [7, 0], sizes = [1, 64], strides = [1, 1]} : vector<8x64xf32> to vector<1x64xf32>
    %c15 = arith.constant 15 : index
    %c4_27 = arith.constant 4 : index
    %32 = vector.load %arg14[%c15, %c4_27] : memref<18x72xf32, #tpu.memory_space<vmem>>, vector<1x64xf32>
    tpu.vector_store %arg14[%c15, %c4_27], %31 {strides = array<i32>} : memref<18x72xf32, #tpu.memory_space<vmem>>, vector<1x64xf32>,
    %c1_28 = arith.constant 1 : index
    %c0_29 = arith.constant 0 : index
    %c0_30 = arith.constant 0 : index
    %33 = vector.load %arg3[%c1_28, %c0_29, %c0_30] : memref<2x64x64xf32, #tpu.memory_space<vmem>>, vector<1x64x64xf32>
    %34 = vector.shape_cast %33 : vector<1x64x64xf32> to vector<64x64xf32>
    %cst_31 = arith.constant dense<0.000000e+00> : vector<8x64xf32>
    %35 = tpu.matmul %10, %34, %cst_31 {dimension_numbers = #tpu.dot_dimension_numbers<[1], [0], [0], [1], [0, 0, 1, 1], [], []>} : vector<8x64xf32>, vector<64x64xf32>, vector<8x64xf32> -> vector<8x64xf32>
    %c0_32 = arith.constant 0 : index
    %c0_33 = arith.constant 0 : index
    %36 = vector.load %arg4[%c0_32, %c0_33] : memref<1x64xf32, #tpu.memory_space<vmem>>, vector<1x64xf32>
    %37 = vector.broadcast %36 : vector<1x64xf32> to vector<8x64xf32>
    %38 = arith.addf %35, %37 : vector<8x64xf32>
    %39 = vector.extract_strided_slice %38 {offsets = [0, 0], sizes = [1, 64], strides = [1, 1]} : vector<8x64xf32> to vector<1x64xf32>
    %c2 = arith.constant 2 : index
    %c4_34 = arith.constant 4 : index
    %40 = vector.load %arg14[%c2, %c4_34] : memref<18x72xf32, #tpu.memory_space<vmem>>, vector<1x64xf32>
    tpu.vector_store %arg14[%c2, %c4_34], %39 {strides = array<i32>} : memref<18x72xf32, #tpu.memory_space<vmem>>, vector<1x64xf32>,
    %41 = vector.extract_strided_slice %38 {offsets = [1, 0], sizes = [1, 64], strides = [1, 1]} : vector<8x64xf32> to vector<1x64xf32>
    %c4_35 = arith.constant 4 : index
    %c4_36 = arith.constant 4 : index
    %42 = vector.load %arg14[%c4_35, %c4_36] : memref<18x72xf32, #tpu.memory_space<vmem>>, vector<1x64xf32>
    tpu.vector_store %arg14[%c4_35, %c4_36], %41 {strides = array<i32>} : memref<18x72xf32, #tpu.memory_space<vmem>>, vector<1x64xf32>,
    %43 = vector.extract_strided_slice %38 {offsets = [2, 0], sizes = [1, 64], strides = [1, 1]} : vector<8x64xf32> to vector<1x64xf32>
    %c6 = arith.constant 6 : index
    %c4_37 = arith.constant 4 : index
    %44 = vector.load %arg14[%c6, %c4_37] : memref<18x72xf32, #tpu.memory_space<vmem>>, vector<1x64xf32>
    tpu.vector_store %arg14[%c6, %c4_37], %43 {strides = array<i32>} : memref<18x72xf32, #tpu.memory_space<vmem>>, vector<1x64xf32>,
    %45 = vector.extract_strided_slice %38 {offsets = [3, 0], sizes = [1, 64], strides = [1, 1]} : vector<8x64xf32> to vector<1x64xf32>
    %c8 = arith.constant 8 : index
    %c4_38 = arith.constant 4 : index
    %46 = vector.load %arg14[%c8, %c4_38] : memref<18x72xf32, #tpu.memory_space<vmem>>, vector<1x64xf32>
    tpu.vector_store %arg14[%c8, %c4_38], %45 {strides = array<i32>} : memref<18x72xf32, #tpu.memory_space<vmem>>, vector<1x64xf32>,
    %47 = vector.extract_strided_slice %38 {offsets = [4, 0], sizes = [1, 64], strides = [1, 1]} : vector<8x64xf32> to vector<1x64xf32>
    %c10 = arith.constant 10 : index
    %c4_39 = arith.constant 4 : index
    %48 = vector.load %arg14[%c10, %c4_39] : memref<18x72xf32, #tpu.memory_space<vmem>>, vector<1x64xf32>
    tpu.vector_store %arg14[%c10, %c4_39], %47 {strides = array<i32>} : memref<18x72xf32, #tpu.memory_space<vmem>>, vector<1x64xf32>,
    %49 = vector.extract_strided_slice %38 {offsets = [5, 0], sizes = [1, 64], strides = [1, 1]} : vector<8x64xf32> to vector<1x64xf32>
    %c12 = arith.constant 12 : index
    %c4_40 = arith.constant 4 : index
    %50 = vector.load %arg14[%c12, %c4_40] : memref<18x72xf32, #tpu.memory_space<vmem>>, vector<1x64xf32>
    tpu.vector_store %arg14[%c12, %c4_40], %49 {strides = array<i32>} : memref<18x72xf32, #tpu.memory_space<vmem>>, vector<1x64xf32>,
    %51 = vector.extract_strided_slice %38 {offsets = [6, 0], sizes = [1, 64], strides = [1, 1]} : vector<8x64xf32> to vector<1x64xf32>
    %c14 = arith.constant 14 : index
    %c4_41 = arith.constant 4 : index
    %52 = vector.load %arg14[%c14, %c4_41] : memref<18x72xf32, #tpu.memory_space<vmem>>, vector<1x64xf32>
    tpu.vector_store %arg14[%c14, %c4_41], %51 {strides = array<i32>} : memref<18x72xf32, #tpu.memory_space<vmem>>, vector<1x64xf32>,
    %53 = vector.extract_strided_slice %38 {offsets = [7, 0], sizes = [1, 64], strides = [1, 1]} : vector<8x64xf32> to vector<1x64xf32>
    %c16 = arith.constant 16 : index
    %c4_42 = arith.constant 4 : index
    %54 = vector.load %arg14[%c16, %c4_42] : memref<18x72xf32, #tpu.memory_space<vmem>>, vector<1x64xf32>
    tpu.vector_store %arg14[%c16, %c4_42], %53 {strides = array<i32>} : memref<18x72xf32, #tpu.memory_space<vmem>>, vector<1x64xf32>,
    %cst_43 = arith.constant 0.000000e+00 : f32
    %55 = vector.broadcast %cst_43 : f32 to vector<16x64xf32>
    %c0_44 = arith.constant 0 : index
    %c0_45 = arith.constant 0 : index
    %56 = vector.load %arg13[%c0_44, %c0_45] : memref<18x72xf32, #tpu.memory_space<vmem>>, vector<16x72xf32>
    %c0_46 = arith.constant 0 : index
    %c0_47 = arith.constant 0 : index
    %c0_48 = arith.constant 0 : index
    %57 = vector.load %arg5[%c0_46, %c0_47, %c0_48] : memref<3x72x64xf32, #tpu.memory_space<vmem>>, vector<1x72x64xf32>
    %58 = vector.shape_cast %57 : vector<1x72x64xf32> to vector<72x64xf32>
    %cst_49 = arith.constant dense<0.000000e+00> : vector<16x64xf32>
    %59 = tpu.matmul %56, %58, %cst_49 {dimension_numbers = #tpu.dot_dimension_numbers<[1], [0], [0], [1], [0, 0, 1, 1], [], []>} : vector<16x72xf32>, vector<72x64xf32>, vector<16x64xf32> -> vector<16x64xf32>
    %60 = arith.addf %55, %59 : vector<16x64xf32>
    %c0_50 = arith.constant 0 : index
    %c0_51 = arith.constant 0 : index
    %61 = vector.load %arg14[%c0_50, %c0_51] : memref<18x72xf32, #tpu.memory_space<vmem>>, vector<16x72xf32>
    %c0_52 = arith.constant 0 : index
    %c0_53 = arith.constant 0 : index
    %c0_54 = arith.constant 0 : index
    %62 = vector.load %arg6[%c0_52, %c0_53, %c0_54] : memref<3x72x64xf32, #tpu.memory_space<vmem>>, vector<1x72x64xf32>
    %63 = vector.shape_cast %62 : vector<1x72x64xf32> to vector<72x64xf32>
    %cst_55 = arith.constant dense<0.000000e+00> : vector<16x64xf32>
    %64 = tpu.matmul %61, %63, %cst_55 {dimension_numbers = #tpu.dot_dimension_numbers<[1], [0], [0], [1], [0, 0, 1, 1], [], []>} : vector<16x72xf32>, vector<72x64xf32>, vector<16x64xf32> -> vector<16x64xf32>
    %65 = arith.addf %60, %64 : vector<16x64xf32>
    %c1_56 = arith.constant 1 : index
    %c0_57 = arith.constant 0 : index
    %66 = vector.load %arg13[%c1_56, %c0_57] : memref<18x72xf32, #tpu.memory_space<vmem>>, vector<16x72xf32>
    %c1_58 = arith.constant 1 : index
    %c0_59 = arith.constant 0 : index
    %c0_60 = arith.constant 0 : index
    %67 = vector.load %arg5[%c1_58, %c0_59, %c0_60] : memref<3x72x64xf32, #tpu.memory_space<vmem>>, vector<1x72x64xf32>
    %68 = vector.shape_cast %67 : vector<1x72x64xf32> to vector<72x64xf32>
    %cst_61 = arith.constant dense<0.000000e+00> : vector<16x64xf32>
    %69 = tpu.matmul %66, %68, %cst_61 {dimension_numbers = #tpu.dot_dimension_numbers<[1], [0], [0], [1], [0, 0, 1, 1], [], []>} : vector<16x72xf32>, vector<72x64xf32>, vector<16x64xf32> -> vector<16x64xf32>
    %70 = arith.addf %65, %69 : vector<16x64xf32>
    %c1_62 = arith.constant 1 : index
    %c0_63 = arith.constant 0 : index
    %71 = vector.load %arg14[%c1_62, %c0_63] : memref<18x72xf32, #tpu.memory_space<vmem>>, vector<16x72xf32>
    %c1_64 = arith.constant 1 : index
    %c0_65 = arith.constant 0 : index
    %c0_66 = arith.constant 0 : index
    %72 = vector.load %arg6[%c1_64, %c0_65, %c0_66] : memref<3x72x64xf32, #tpu.memory_space<vmem>>, vector<1x72x64xf32>
    %73 = vector.shape_cast %72 : vector<1x72x64xf32> to vector<72x64xf32>
    %cst_67 = arith.constant dense<0.000000e+00> : vector<16x64xf32>
    %74 = tpu.matmul %71, %73, %cst_67 {dimension_numbers = #tpu.dot_dimension_numbers<[1], [0], [0], [1], [0, 0, 1, 1], [], []>} : vector<16x72xf32>, vector<72x64xf32>, vector<16x64xf32> -> vector<16x64xf32>
    %75 = arith.addf %70, %74 : vector<16x64xf32>
    %c2_68 = arith.constant 2 : index
    %c0_69 = arith.constant 0 : index
    %76 = vector.load %arg13[%c2_68, %c0_69] : memref<18x72xf32, #tpu.memory_space<vmem>>, vector<16x72xf32>
    %c2_70 = arith.constant 2 : index
    %c0_71 = arith.constant 0 : index
    %c0_72 = arith.constant 0 : index
    %77 = vector.load %arg5[%c2_70, %c0_71, %c0_72] : memref<3x72x64xf32, #tpu.memory_space<vmem>>, vector<1x72x64xf32>
    %78 = vector.shape_cast %77 : vector<1x72x64xf32> to vector<72x64xf32>
    %cst_73 = arith.constant dense<0.000000e+00> : vector<16x64xf32>
    %79 = tpu.matmul %76, %78, %cst_73 {dimension_numbers = #tpu.dot_dimension_numbers<[1], [0], [0], [1], [0, 0, 1, 1], [], []>} : vector<16x72xf32>, vector<72x64xf32>, vector<16x64xf32> -> vector<16x64xf32>
    %80 = arith.addf %75, %79 : vector<16x64xf32>
    %c2_74 = arith.constant 2 : index
    %c0_75 = arith.constant 0 : index
    %81 = vector.load %arg14[%c2_74, %c0_75] : memref<18x72xf32, #tpu.memory_space<vmem>>, vector<16x72xf32>
    %c2_76 = arith.constant 2 : index
    %c0_77 = arith.constant 0 : index
    %c0_78 = arith.constant 0 : index
    %82 = vector.load %arg6[%c2_76, %c0_77, %c0_78] : memref<3x72x64xf32, #tpu.memory_space<vmem>>, vector<1x72x64xf32>
    %83 = vector.shape_cast %82 : vector<1x72x64xf32> to vector<72x64xf32>
    %cst_79 = arith.constant dense<0.000000e+00> : vector<16x64xf32>
    %84 = tpu.matmul %81, %83, %cst_79 {dimension_numbers = #tpu.dot_dimension_numbers<[1], [0], [0], [1], [0, 0, 1, 1], [], []>} : vector<16x72xf32>, vector<72x64xf32>, vector<16x64xf32> -> vector<16x64xf32>
    %85 = arith.addf %80, %84 : vector<16x64xf32>
    %c0_80 = arith.constant 0 : index
    %c0_81 = arith.constant 0 : index
    %86 = vector.load %arg7[%c0_80, %c0_81] : memref<1x64xf32, #tpu.memory_space<vmem>>, vector<1x64xf32>
    %87 = vector.broadcast %86 : vector<1x64xf32> to vector<16x64xf32>
    %88 = arith.mulf %85, %87 : vector<16x64xf32>
    %c0_82 = arith.constant 0 : index
    %c0_83 = arith.constant 0 : index
    %89 = vector.load %arg8[%c0_82, %c0_83] : memref<1x64xf32, #tpu.memory_space<vmem>>, vector<1x64xf32>
    %90 = vector.broadcast %89 : vector<1x64xf32> to vector<16x64xf32>
    %91 = arith.addf %88, %90 : vector<16x64xf32>
    %cst_84 = arith.constant 0.000000e+00 : f32
    %92 = vector.broadcast %cst_84 : f32 to vector<16x64xf32>
    %93 = arith.maximumf %91, %92 : vector<16x64xf32>
    %c1_85 = arith.constant 1 : index
    %c4_86 = arith.constant 4 : index
    %94 = vector.load %arg15[%c1_85, %c4_86] : memref<18x72xf32, #tpu.memory_space<vmem>>, vector<16x64xf32>
    tpu.vector_store %arg15[%c1_85, %c4_86], %93 {strides = array<i32>} : memref<18x72xf32, #tpu.memory_space<vmem>>, vector<16x64xf32>,
    %cst_87 = arith.constant 0.000000e+00 : f32
    %95 = vector.broadcast %cst_87 : f32 to vector<16x64xf32>
    %c0_88 = arith.constant 0 : index
    %c0_89 = arith.constant 0 : index
    %96 = vector.load %arg15[%c0_88, %c0_89] : memref<18x72xf32, #tpu.memory_space<vmem>>, vector<16x72xf32>
    %c0_90 = arith.constant 0 : index
    %c0_91 = arith.constant 0 : index
    %c0_92 = arith.constant 0 : index
    %97 = vector.load %arg9[%c0_90, %c0_91, %c0_92] : memref<3x72x64xf32, #tpu.memory_space<vmem>>, vector<1x72x64xf32>
    %98 = vector.shape_cast %97 : vector<1x72x64xf32> to vector<72x64xf32>
    %cst_93 = arith.constant dense<0.000000e+00> : vector<16x64xf32>
    %99 = tpu.matmul %96, %98, %cst_93 {dimension_numbers = #tpu.dot_dimension_numbers<[1], [0], [0], [1], [0, 0, 1, 1], [], []>} : vector<16x72xf32>, vector<72x64xf32>, vector<16x64xf32> -> vector<16x64xf32>
    %100 = arith.addf %95, %99 : vector<16x64xf32>
    %c1_94 = arith.constant 1 : index
    %c0_95 = arith.constant 0 : index
    %101 = vector.load %arg15[%c1_94, %c0_95] : memref<18x72xf32, #tpu.memory_space<vmem>>, vector<16x72xf32>
    %c1_96 = arith.constant 1 : index
    %c0_97 = arith.constant 0 : index
    %c0_98 = arith.constant 0 : index
    %102 = vector.load %arg9[%c1_96, %c0_97, %c0_98] : memref<3x72x64xf32, #tpu.memory_space<vmem>>, vector<1x72x64xf32>
    %103 = vector.shape_cast %102 : vector<1x72x64xf32> to vector<72x64xf32>
    %cst_99 = arith.constant dense<0.000000e+00> : vector<16x64xf32>
    %104 = tpu.matmul %101, %103, %cst_99 {dimension_numbers = #tpu.dot_dimension_numbers<[1], [0], [0], [1], [0, 0, 1, 1], [], []>} : vector<16x72xf32>, vector<72x64xf32>, vector<16x64xf32> -> vector<16x64xf32>
    %105 = arith.addf %100, %104 : vector<16x64xf32>
    %c2_100 = arith.constant 2 : index
    %c0_101 = arith.constant 0 : index
    %106 = vector.load %arg15[%c2_100, %c0_101] : memref<18x72xf32, #tpu.memory_space<vmem>>, vector<16x72xf32>
    %c2_102 = arith.constant 2 : index
    %c0_103 = arith.constant 0 : index
    %c0_104 = arith.constant 0 : index
    %107 = vector.load %arg9[%c2_102, %c0_103, %c0_104] : memref<3x72x64xf32, #tpu.memory_space<vmem>>, vector<1x72x64xf32>
    %108 = vector.shape_cast %107 : vector<1x72x64xf32> to vector<72x64xf32>
    %cst_105 = arith.constant dense<0.000000e+00> : vector<16x64xf32>
    %109 = tpu.matmul %106, %108, %cst_105 {dimension_numbers = #tpu.dot_dimension_numbers<[1], [0], [0], [1], [0, 0, 1, 1], [], []>} : vector<16x72xf32>, vector<72x64xf32>, vector<16x64xf32> -> vector<16x64xf32>
    %110 = arith.addf %105, %109 : vector<16x64xf32>
    %c0_106 = arith.constant 0 : index
    %c0_107 = arith.constant 0 : index
    %111 = vector.load %arg10[%c0_106, %c0_107] : memref<1x64xf32, #tpu.memory_space<vmem>>, vector<1x64xf32>
    %112 = vector.broadcast %111 : vector<1x64xf32> to vector<16x64xf32>
    %113 = arith.mulf %110, %112 : vector<16x64xf32>
    %c0_108 = arith.constant 0 : index
    %c0_109 = arith.constant 0 : index
    %114 = vector.load %arg11[%c0_108, %c0_109] : memref<1x64xf32, #tpu.memory_space<vmem>>, vector<1x64xf32>
    %115 = vector.broadcast %114 : vector<1x64xf32> to vector<16x64xf32>
    %116 = arith.addf %113, %115 : vector<16x64xf32>
    %cst_110 = arith.constant 0.000000e+00 : f32
    %117 = vector.broadcast %cst_110 : f32 to vector<16x64xf32>
    %118 = arith.maximumf %116, %117 : vector<16x64xf32>
    %c0_111 = arith.constant 0 : index
    %c0_112 = arith.constant 0 : index
    %c0_113 = arith.constant 0 : index
    %119 = vector.load %arg12[%c0_111, %c0_112, %c0_113] : memref<1x16x64xf32, #tpu.memory_space<vmem>>, vector<1x16x64xf32>
    %120 = vector.shape_cast %119 : vector<1x16x64xf32> to vector<16x64xf32>
    %121 = vector.shape_cast %118 : vector<16x64xf32> to vector<1x16x64xf32>
    tpu.vector_store %arg12[%c0_111, %c0_112, %c0_113], %121 {strides = array<i32>} : memref<1x16x64xf32, #tpu.memory_space<vmem>>, vector<1x16x64xf32>,
    return
  }
  func.func @transform_0(%arg0: i32) -> (i32, i32, i32) {
    %c0_i32 = arith.constant 0 : i32
    %c0_i32_0 = arith.constant 0 : i32
    %c0_i32_1 = arith.constant 0 : i32
    return %arg0, %c0_i32, %c0_i32_0 : i32, i32, i32
  }
  func.func @transform_1(%arg0: i32) -> (i32, i32, i32) {
    %c0_i32 = arith.constant 0 : i32
    %c0_i32_0 = arith.constant 0 : i32
    %c0_i32_1 = arith.constant 0 : i32
    return %arg0, %c0_i32, %c0_i32_0 : i32, i32, i32
  }
  func.func @transform_2(%arg0: i32) -> (i32, i32, i32) {
    %c0_i32 = arith.constant 0 : i32
    %c0_i32_0 = arith.constant 0 : i32
    %c0_i32_1 = arith.constant 0 : i32
    %c0_i32_2 = arith.constant 0 : i32
    return %c0_i32, %c0_i32_0, %c0_i32_1 : i32, i32, i32
  }
  func.func @transform_3(%arg0: i32) -> (i32, i32) {
    %c0_i32 = arith.constant 0 : i32
    %c0_i32_0 = arith.constant 0 : i32
    %c0_i32_1 = arith.constant 0 : i32
    return %c0_i32, %c0_i32_0 : i32, i32
  }
  func.func @transform_4(%arg0: i32) -> (i32, i32, i32) {
    %c0_i32 = arith.constant 0 : i32
    %c0_i32_0 = arith.constant 0 : i32
    %c0_i32_1 = arith.constant 0 : i32
    %c0_i32_2 = arith.constant 0 : i32
    return %c0_i32, %c0_i32_0, %c0_i32_1 : i32, i32, i32
  }
  func.func @transform_5(%arg0: i32) -> (i32, i32, i32) {
    %c0_i32 = arith.constant 0 : i32
    %c0_i32_0 = arith.constant 0 : i32
    %c0_i32_1 = arith.constant 0 : i32
    %c0_i32_2 = arith.constant 0 : i32
    return %c0_i32, %c0_i32_0, %c0_i32_1 : i32, i32, i32
  }
  func.func @transform_6(%arg0: i32) -> (i32, i32) {
    %c0_i32 = arith.constant 0 : i32
    %c0_i32_0 = arith.constant 0 : i32
    %c0_i32_1 = arith.constant 0 : i32
    return %c0_i32, %c0_i32_0 : i32, i32
  }
  func.func @transform_7(%arg0: i32) -> (i32, i32) {
    %c0_i32 = arith.constant 0 : i32
    %c0_i32_0 = arith.constant 0 : i32
    %c0_i32_1 = arith.constant 0 : i32
    return %c0_i32, %c0_i32_0 : i32, i32
  }
  func.func @transform_8(%arg0: i32) -> (i32, i32, i32) {
    %c0_i32 = arith.constant 0 : i32
    %c0_i32_0 = arith.constant 0 : i32
    %c0_i32_1 = arith.constant 0 : i32
    %c0_i32_2 = arith.constant 0 : i32
    return %c0_i32, %c0_i32_0, %c0_i32_1 : i32, i32, i32
  }
  func.func @transform_9(%arg0: i32) -> (i32, i32) {
    %c0_i32 = arith.constant 0 : i32
    %c0_i32_0 = arith.constant 0 : i32
    %c0_i32_1 = arith.constant 0 : i32
    return %c0_i32, %c0_i32_0 : i32, i32
  }
  func.func @transform_10(%arg0: i32) -> (i32, i32) {
    %c0_i32 = arith.constant 0 : i32
    %c0_i32_0 = arith.constant 0 : i32
    %c0_i32_1 = arith.constant 0 : i32
    return %c0_i32, %c0_i32_0 : i32, i32
  }
  func.func @transform_11(%arg0: i32) -> (i32, i32, i32) {
    %c0_i32 = arith.constant 0 : i32
    %c0_i32_0 = arith.constant 0 : i32
    %c0_i32_1 = arith.constant 0 : i32
    return %arg0, %c0_i32, %c0_i32_0 : i32, i32, i32
  }
}

</mosaic_0001>

<bundles_post_ra>
// kernel: tile.28
= control target key start
LH: loop header
LB: loop body
LE: loop exit
PB: predicated region body
PF: predicated region fallthrough
CT: control target
= control target key end

     0   :  { %s28_s0 = inlined_call_operand.vmem [shape: f32[4], index: 0, kind: input, shape index: {}]   ;;  %s29_s1 = inlined_call_operand.vmem [shape: f32[16,4], index: 1, kind: output, shape index: {}]  }
   0x1   :  { %v4_v0 = vld [vmem:[%s28_s0] ss:$0 sm:$0xff] }
   0x2   :  { %5 = vst [vmem:[%s29_s1] sm:$0xff] %v4_v0  ;;  %8 = vst [vmem:[%s29_s1 + $0x8] sm:$0xff] %v4_v0 }

// kernel: tile.29
= control target key start
LH: loop header
LB: loop body
LE: loop exit
PB: predicated region body
PF: predicated region fallthrough
CT: control target
= control target key end

     0   :  { %s131_s10 = smov 60   ;;  %s132_s11 = smov 52   ;;  %vm3_vm0 = vcmask 31744   ;;  %vm9_vm1 = vcmask 523744   ;;  %vm15_vm2 = vcmask 490944   ;;  %vm21_vm3 = vcmask 458144   ;;  %s207_s0 = inlined_call_operand.vmem [shape: f32[16,4], index: 0, kind: input, shape index: {}]   ;;  %s208_s1 = inlined_call_operand.vmem [shape: f32[1,64], index: 1, kind: output, shape index: {}]  }
   0x1   :  { %v101_v0 = vld [vmem:[%s207_s0 + $0xf] sm:$0x1]   ;;  %v103_v1 = vld [vmem:[%s207_s0 + $0xd] sm:$0x1]   ;;  %v102_v2 = vld [vmem:[%s207_s0 + $0xe] sm:$0x1]  }
   0x2   :  { %7 = vrot.lane.b32.xlu0 %v101_v0, %s131_s10  ;;  %19 = vrot.lane.b32.xlu1 %v103_v1, %s132_s11  ;;  %v104_v3 = vld [vmem:[%s207_s0 + $0xc] sm:$0x1]   ;;  %s133_s16 = smov 56   ;;  %s134_s17 = smov 48   ;;  %v105_v4 = vld [vmem:[%s207_s0 + $0xb] sm:$0x1]  }
   0x3   :  { %v106_v5 = vld [vmem:[%s207_s0 + $0xa] sm:$0x1]   ;;  %v2_v6 = vld [vmem:[%s207_s0] sm:$0x1]   ;;  %s135_s24 = smov 44   ;;  %s136_s25 = smov 40  }
   0x4   :  { %4 = vst.msk [vmem:[#allocation0] sm:$0x1] %vm3_vm0, %v2_v6   ;;  %v107_v7 = vld [vmem:[%s207_s0 + $0x9] sm:$0x1]   ;;  %v108_v8 = vld [vmem:[%s207_s0 + $0x8] sm:$0x1]  }
   0x5   :  { %s137_s30 = smov 36   ;;  %s138_s2 = smov 32   ;;  %v109_v9 = vld [vmem:[%s207_s0 + $0x7] sm:$0x1]   ;;  %v110_v10 = vld [vmem:[%s207_s0 + $0x6] sm:$0x1]  }
   0x6   :  { %13 = vrot.lane.b32.xlu0 %v102_v2, %s133_s16  ;;  %25 = vrot.lane.b32.xlu1 %v104_v3, %s134_s17  ;;  %s139_s7 = smov 28   ;;  %s140_s8 = smov 24   ;;  %v111_v11 = vld [vmem:[%s207_s0 + $0x5] sm:$0x1]   ;;  %v112_v12 = vld [vmem:[%s207_s0 + $0x4] sm:$0x1]  }
   0x7   :  { %s141_s13 = smov 20   ;;  %s142_s14 = smov 16   ;;  %v113_v13 = vld [vmem:[%s207_s0 + $0x3] sm:$0x1]   ;;  %v114_v14 = vld [vmem:[%s207_s0 + $0x2] sm:$0x1]  }
   0x8   :  { %s143_s19 = smov 12   ;;  %s144_s20 = smov 8   ;;  %v115_v15 = vld [vmem:[%s207_s0 + $0x1] sm:$0x1]   ;;  %vm27_vm4 = vcmask 425344   ;;  %vm33_vm5 = vcmask 392544  }
   0x9   :  { %s145_s0 = smov 4   ;;  %vm39_vm6 = vcmask 359744   ;;  %vm45_vm7 = vcmask 326944   ;;  %vm51_vm8 = vcmask 294144   ;;  %vm57_vm9 = vcmask 261344  }
   0xa   :  { %31 = vrot.lane.b32.xlu0 %v105_v4, %s135_s24  ;;  %37 = vrot.lane.b32.xlu1 %v106_v5, %s136_s25  ;;  %vm63_vm10 = vcmask 228544   ;;  %vm69_vm11 = vcmask 195744   ;;  %vm75_vm12 = vcmask 162944   ;;  %vm81_vm13 = vcmask 130144  }
   0xb   :  { %vm87_vm14 = vcmask 97344   ;;  %vm93_vm15 = vcmask 64544  }
   0xe   :  { %43 = vrot.lane.b32.xlu0 %v107_v7, %s137_s30  ;;  %49 = vrot.lane.b32.xlu1 %v108_v8, %s138_s2 }
  0x12   :  { %55 = vrot.lane.b32.xlu0 %v109_v9, %s139_s7  ;;  %61 = vrot.lane.b32.xlu1 %v110_v10, %s140_s8 }
  0x16   :  { %67 = vrot.lane.b32.xlu0 %v111_v11, %s141_s13  ;;  %73 = vrot.lane.b32.xlu1 %v112_v12, %s142_s14 }
  0x1a   :  { %79 = vrot.lane.b32.xlu0 %v113_v13, %s143_s19  ;;  %85 = vrot.lane.b32.xlu1 %v114_v14, %s144_s20 }
  0x1e   :  { %91 = vrot.lane.b32.xlu0 %v115_v15, %s145_s0 }
  0x74   :  { %v8_v16 = vpop.permute.xlu0 %7   ;;  %v20_v17 = vpop.permute.xlu1 %19  }
  0x75   :  { %10 = vst.msk [vmem:[#allocation0] sm:$0x1] %vm9_vm1, %v8_v16  }
  0x78   :  { %v14_v18 = vpop.permute.xlu0 %13   ;;  %v26_v19 = vpop.permute.xlu1 %25  }
  0x79   :  { %16 = vst.msk [vmem:[#allocation0] sm:$0x1] %vm15_vm2, %v14_v18  }
  0x7a   :  { %22 = vst.msk [vmem:[#allocation0] sm:$0x1] %vm21_vm3, %v20_v17  }
  0x7b   :  { %28 = vst.msk [vmem:[#allocation0] sm:$0x1] %vm27_vm4, %v26_v19  }
  0x7c   :  { %v32_v20 = vpop.permute.xlu0 %31   ;;  %v38_v21 = vpop.permute.xlu1 %37  }
  0x7d   :  { %34 = vst.msk [vmem:[#allocation0] sm:$0x1] %vm33_vm5, %v32_v20  }
  0x7e   :  { %40 = vst.msk [vmem:[#allocation0] sm:$0x1] %vm39_vm6, %v38_v21  }
  0x80   :  { %v44_v22 = vpop.permute.xlu0 %43   ;;  %v50_v23 = vpop.permute.xlu1 %49  }
  0x81   :  { %46 = vst.msk [vmem:[#allocation0] sm:$0x1] %vm45_vm7, %v44_v22  }
  0x82   :  { %52 = vst.msk [vmem:[#allocation0] sm:$0x1] %vm51_vm8, %v50_v23  }
  0x84   :  { %v56_v24 = vpop.permute.xlu0 %55   ;;  %v62_v25 = vpop.permute.xlu1 %61  }
  0x85   :  { %58 = vst.msk [vmem:[#allocation0] sm:$0x1] %vm57_vm9, %v56_v24  }
  0x86   :  { %64 = vst.msk [vmem:[#allocation0] sm:$0x1] %vm63_vm10, %v62_v25  }
  0x88   :  { %v68_v26 = vpop.permute.xlu0 %67   ;;  %v74_v27 = vpop.permute.xlu1 %73  }
  0x89   :  { %70 = vst.msk [vmem:[#allocation0] sm:$0x1] %vm69_vm11, %v68_v26  }
  0x8a   :  { %76 = vst.msk [vmem:[#allocation0] sm:$0x1] %vm75_vm12, %v74_v27  }
  0x8c   :  { %v80_v28 = vpop.permute.xlu0 %79   ;;  %v86_v29 = vpop.permute.xlu1 %85  }
  0x8d   :  { %82 = vst.msk [vmem:[#allocation0] sm:$0x1] %vm81_vm13, %v80_v28  }
  0x8e   :  { %88 = vst.msk [vmem:[#allocation0] sm:$0x1] %vm87_vm14, %v86_v29  }
  0x90   :  { %v92_v30 = vpop.permute.xlu0 %91  }
  0x91   :  { %94 = vst.msk [vmem:[#allocation0] sm:$0x1] %vm93_vm15, %v92_v30  }
  0x98   :  { %v98_v31 = vld [vmem:[#allocation0] sm:$0x1] }
  0x99   :  { %100 = vst [vmem:[%s208_s1] sm:$0x1] %v98_v31 }

// kernel: up_forward.1
= control target key start
LH: loop header
LB: loop body
LE: loop exit
PB: predicated region body
PF: predicated region fallthrough
CT: control target
= control target key end

     0   :  { %s2311_s17 = smov 0   ;;  %s2712_s0 = inlined_call_operand.vmem [shape: f32[2,8,64], index: 0, kind: input, shape index: {}]   ;;  %s2713_s1 = inlined_call_operand.vmem [shape: f32[2,16,64], index: 1, kind: input, shape index: {}]   ;;  %s2714_s2 = inlined_call_operand.vmem [shape: f32[2,64,64], index: 2, kind: input, shape index: {}]   ;;  %s2715_s3 = inlined_call_operand.vmem [shape: f32[1,64], index: 3, kind: input, shape index: {}]   ;;  %s2716_s4 = inlined_call_operand.vmem [shape: f32[3,72,64], index: 4, kind: input, shape index: {}]   ;;  %s2717_s5 = inlined_call_operand.vmem [shape: f32[3,72,64], index: 5, kind: input, shape index: {}]   ;;  %s2718_s6 = inlined_call_operand.vmem [shape: f32[1,64], index: 6, kind: input, shape index: {}]   ;;  %s2719_s7 = inlined_call_operand.vmem [shape: f32[1,64], index: 7, kind: input, shape index: {}]   ;;  %s2720_s8 = inlined_call_operand.vmem [shape: f32[3,72,64], index: 8, kind: input, shape index: {}]   ;;  %s2721_s9 = inlined_call_operand.vmem [shape: f32[1,64], index: 9, kind: input, shape index: {}]   ;;  %s2722_s10 = inlined_call_operand.vmem [shape: f32[1,64], index: 10, kind: input, shape index: {}]   ;;  %s2723_s11 = inlined_call_operand.vmem [shape: f32[2,16,64], index: 11, kind: output, shape index: {}]  }
   0x1 LB: > { %s1599_s18 = sadd.s32 4294967295, %s2245_s17   ;;  %p1603_p0 = scmp.ge.s32.totalorder %s2245_s17, 1  ;;  %s2245_s17 = sphi %s2311_s17, %s21_s17  }
   0x2   : > { %p346_p1 = scmp.lt.s32.totalorder %s2245_s17, 3 }
   0x4   : > { %p347_p2 = pnand %p1603_p0, %p346_p1 }
   0x5   : > { %v429_v0 = vld [vmem:[%s2714_s2] sm:$0xff] (!%p347_p2)  ;;  %v430_v1 = vld [vmem:[%s2714_s2 + $0x8] sm:$0xff] (!%p347_p2)  ;;  %v431_v2 = vld [vmem:[%s2714_s2 + $0x10] sm:$0xff] (!%p347_p2)  ;;  %v2247_v3 = vmov (!%p347_p2), 0.0|0.0   ;;  %vm2248_vm0 = vmmov (!%p347_p2), 0   ;;  %v2249_v6 = vmov (!%p347_p2), 0.0  }
   0x6   : > { %350 = sbr.rel (%p347_p2) target bundleno = 1020 (0x3fc), region = 64  ;;  %2045 = vmatprep.subr.bf16.mxu1 (!%p347_p2), %v2247_v3  ;;  %v2046_v4 = vpack.c.bf16 (!%p347_p2), %v430_v1, %v429_v0  ;;  %v432_v5 = vld [vmem:[%s2714_s2 + $0x18] sm:$0xff] (!%p347_p2)  ;;  %1834 = vmatprep.mubr.msk.f32.mxu1 (!%p347_p2), %vm2248_vm0, %v2249_v6  ;;  %p390_p3 = scmp.lt.s32.totalorder (!%p347_p2), %s1599_s18, 1  ;;  %v433_v8 = vld [vmem:[%s2714_s2 + $0x20] sm:$0xff] (!%p347_p2)  ;;  %v434_v9 = vld [vmem:[%s2714_s2 + $0x28] sm:$0xff] (!%p347_p2)  ;;  %vm444_vm1 = vcmask (!%p347_p2), 523264  }
   0x7   : > { %v2049_v7 = vpack.c.bf16 (!%p347_p2), %v432_v5, %v431_v2  ;;  %v2052_v10 = vpack.c.bf16 (!%p347_p2), %v434_v9, %v433_v8  ;;  %v435_v12 = vld [vmem:[%s2714_s2 + $0x30] sm:$0xff] (!%p347_p2)  ;;  %v436_v13 = vld [vmem:[%s2714_s2 + $0x38] sm:$0xff] (!%p347_p2)  ;;  %s2250_s22 = smov (!%p347_p2), 4   ;;  %v1611_v16 = vld [vmem:[%s2714_s2 + $0x40] sm:$0xff] (!%p347_p2)  ;;  %vm404_vm2 = vcmask (!%p347_p2), 588800   ;;  %vm425_vm3 = vcmask (!%p347_p2), 556064  }
   0x8   : > { %2047 = vmatpush3.bf16.msra.mxu1 (!%p347_p2), %v2046_v4  ;;  %v2055_v15 = vpack.c.bf16 (!%p347_p2), %v436_v13, %v435_v12  ;;  %v1612_v17 = vld [vmem:[%s2714_s2 + $0x48] sm:$0xff] (!%p347_p2)  ;;  %v1613_v20 = vld [vmem:[%s2714_s2 + $0x50] sm:$0xff] (!%p347_p2)  ;;  %v1614_v21 = vld [vmem:[%s2714_s2 + $0x58] sm:$0xff] (!%p347_p2)  ;;  %vm407_vm4 = vcmask (!%p347_p2), 582656   ;;  %405 = vst.msk [vmem:[#allocation2] sm:$0xff] (!%p347_p2), %vm404_vm2, %v2249_v6  ;;  %vm522_vm5 = vcmask (!%p347_p2), 548896  }
   0x9   : > { %2048 = vmatprep.subr.bf16.mxu1 (!%p347_p2), %v2247_v3  ;;  %v2058_v19 = vpack.c.bf16 (!%p347_p2), %v1612_v17, %v1611_v16  ;;  %v2061_v22 = vpack.c.bf16 (!%p347_p2), %v1614_v21, %v1613_v20  ;;  %v1615_v23 = vld [vmem:[%s2714_s2 + $0x60] sm:$0xff] (!%p347_p2)  ;;  %v1616_v24 = vld [vmem:[%s2714_s2 + $0x68] sm:$0xff] (!%p347_p2)  ;;  %v1617_v26 = vld [vmem:[%s2714_s2 + $0x70] sm:$0xff] (!%p347_p2)  ;;  %406 = vst.msk [vmem:[#allocation2 + $0x8] sm:$0xff] (!%p347_p2), %vm404_vm2, %v2249_v6  ;;  %vm524_vm6 = vcmask (!%p347_p2), 549921   ;;  %vm526_vm7 = vcmask (!%p347_p2), 550946  }
   0xa   : > { %v2064_v25 = vpack.c.bf16 (!%p347_p2), %v1616_v24, %v1615_v23  ;;  %v1618_v27 = vld [vmem:[%s2714_s2 + $0x78] sm:$0xff] (!%p347_p2)  ;;  %v638_v29 = vld [vmem:[%s2716_s4] sm:$0xff] (!%p347_p2)  ;;  %v639_v30 = vld [vmem:[%s2716_s4 + $0x8] sm:$0xff] (!%p347_p2)  ;;  %409 = vst.msk [vmem:[#allocation3] sm:$0xff] (!%p347_p2), %vm404_vm2, %v2249_v6  ;;  %vm528_vm8 = vcmask (!%p347_p2), 551971   ;;  %vm530_vm9 = vcmask (!%p347_p2), 552996  }
   0xb   : > { %v2067_v28 = vpack.c.bf16 (!%p347_p2), %v1618_v27, %v1617_v26  ;;  %v640_v31 = vld [vmem:[%s2716_s4 + $0x10] sm:$0xff] (!%p347_p2)  ;;  %v2085_v32 = vpack.c.bf16 (!%p347_p2), %v639_v30, %v638_v29  ;;  %v641_v33 = vld [vmem:[%s2716_s4 + $0x18] sm:$0xff] (!%p347_p2)  ;;  %410 = vst.msk [vmem:[#allocation3 + $0x8] sm:$0xff] (!%p347_p2), %vm404_vm2, %v2249_v6  ;;  %412 = vst.msk [vmem:[#allocation4] sm:$0xff] (!%p347_p2), %vm404_vm2, %v2249_v6  ;;  %vm532_vm10 = vcmask (!%p347_p2), 554021   ;;  %vm534_vm11 = vcmask (!%p347_p2), 555046  }
   0xc   : > { %2050 = vmatpush3.bf16.msra.mxu1 (!%p347_p2), %v2049_v7  ;;  %413 = vst.msk [vmem:[#allocation4 + $0x8] sm:$0xff] (!%p347_p2), %vm404_vm2, %v2249_v6  ;;  %v2089_v34 = vpack.c.bf16 (!%p347_p2), %v641_v33, %v640_v31  ;;  %v642_v36 = vld [vmem:[%s2716_s4 + $0x20] sm:$0xff] (!%p347_p2)  ;;  %v643_v37 = vld [vmem:[%s2716_s4 + $0x28] sm:$0xff] (!%p347_p2)  ;;  %v644_v40 = vld [vmem:[%s2716_s4 + $0x30] sm:$0xff] (!%p347_p2)  ;;  %vm536_vm12 = vcmask (!%p347_p2), 556071  }
   0xd   : > { %s2725_s18 = smov (!%p390_p3, %s1599_s18), 1  ;;  %2051 = vmatprep.subr.bf16.mxu1 %v2247_v3  ;;  %408 = vst.msk [vmem:[#allocation2 + $0x10] sm:$0x3] %vm407_vm4, %v2249_v6  ;;  %411 = vst.msk [vmem:[#allocation3 + $0x10] sm:$0x3] %vm407_vm4, %v2249_v6  ;;  %2086 = vmatprep.subr.bf16.mxu0 %v2085_v32  ;;  %v2093_v38 = vpack.c.bf16 %v643_v37, %v642_v36  ;;  %v645_v41 = vld [vmem:[%s2716_s4 + $0x38] sm:$0xff] }
   0xe   : > { %s1699_s12 = sshll.u32 %s2725_s18, 4  ;;  %s1604_s23 = sshll.u32 %s2725_s18, 3  ;;  %414 = vst.msk [vmem:[#allocation4 + $0x10] sm:$0x3] %vm407_vm4, %v2249_v6  ;;  %2088 = vmatpush3.bf16.msra.mxu0 %v2085_v32  ;;  %v2097_v42 = vpack.c.bf16 %v645_v41, %v644_v40  ;;  %v646_v44 = vld [vmem:[%s2716_s4 + $0x40] sm:$0xff]  ;;  %v1625_v45 = vld [vmem:[%s2716_s4 + $0x48] sm:$0xff] }
   0xf   : > { %s398_s15 = scalar_lea.vmem %s2713_s1, %s1699_s12  ;;  %s393_s26 = scalar_lea.vmem %s2712_s0, %s1604_s23  ;;  %2090 = vmatprep.subr.bf16.mxu0 %v2089_v34  ;;  %v1626_v46 = vld [vmem:[%s2716_s4 + $0x50] sm:$0xff]  ;;  %v1627_v47 = vld [vmem:[%s2716_s4 + $0x58] sm:$0xff]  ;;  %v1628_v48 = vld [vmem:[%s2716_s4 + $0x60] sm:$0xff] }
  0x10   : > { %v415_v11 = vld [vmem:[%s398_s15] sm:$0xff]  ;;  %v416_v14 = vld [vmem:[%s398_s15 + $0x8] sm:$0xff]  ;;  %2053 = vmatpush3.bf16.msra.mxu1 %v2052_v10  ;;  %v2101_v49 = vpack.c.bf16 %v1626_v46, %v1625_v45  ;;  %v2105_v51 = vpack.c.bf16 %v1628_v48, %v1627_v47  ;;  %v1630_v54 = vld [vmem:[%s2716_s4 + $0x70] sm:$0xff]  ;;  %s403_s16 = scalar_lea.vmem %s2723_s11, %s1699_s12 }
  0x11   : > { %419 = vrot.lane.b32.xlu0 %v415_v11, %s2250_s22  ;;  %2054 = vmatprep.subr.bf16.mxu1 %v2247_v3  ;;  %v428_v18 = vld [vmem:[%s393_s26] sm:$0xff]  ;;  %v1629_v53 = vld [vmem:[%s2716_s4 + $0x68] sm:$0xff]  ;;  %v1631_v56 = vld [vmem:[%s2716_s4 + $0x78] sm:$0xff] }
  0x12   : > { %2092 = vmatpush3.bf16.msra.mxu0 %v2089_v34  ;;  %v2109_v55 = vpack.c.bf16 %v1630_v54, %v1629_v53  ;;  %v1632_v57 = vld [vmem:[%s2716_s4 + $0x80] sm:$0xff]  ;;  %v1633_v59 = vld [vmem:[%s2716_s4 + $0x88] sm:$0xff]  ;;  %v1637_v62 = vld [vmem:[%s2717_s5 + $0x50] sm:$0xff] }
  0x13   : > { %2094 = vmatprep.subr.bf16.mxu0 %v2093_v38  ;;  %v2113_v58 = vpack.c.bf16 %v1632_v57, %v1631_v56  ;;  %v1636_v61 = vld [vmem:[%s2717_s5 + $0x48] sm:$0xff]  ;;  %v649_v63 = vld [vmem:[%s2717_s5] sm:$0xff]  ;;  %v1638_v2 = vld [vmem:[%s2717_s5 + $0x58] sm:$0xff] }
  0x14   : > { %2056 = vmatpush3.bf16.msra.mxu1 %v2055_v15  ;;  %v2117_v0 = vpack.c.bf16 %v1637_v62, %v1636_v61  ;;  %v650_v1 = vld [vmem:[%s2717_s5 + $0x8] sm:$0xff]  ;;  %v652_v7 = vld [vmem:[%s2717_s5 + $0x18] sm:$0xff]  ;;  %v1641_v10 = vld [vmem:[%s2717_s5 + $0x70] sm:$0xff] }
  0x15   : > { %421 = vrot.lane.b32.xlu0 %v416_v14, %s2250_s22  ;;  %2057 = vmatprep.subr.bf16.mxu1 %v2247_v3  ;;  %v2069_v4 = vpack.c.bf16 %v650_v1, %v649_v63  ;;  %v1640_v8 = vld [vmem:[%s2717_s5 + $0x68] sm:$0xff]  ;;  %v653_v11 = vld [vmem:[%s2717_s5 + $0x20] sm:$0xff]  ;;  %v656_v23 = vld [vmem:[%s2717_s5 + $0x38] sm:$0xff] }
  0x16   : > { %2096 = vmatpush3.bf16.msra.mxu0 %v2093_v38  ;;  %v654_v12 = vld [vmem:[%s2717_s5 + $0x28] sm:$0xff]  ;;  %v2125_v13 = vpack.c.bf16 %v1641_v10, %v1640_v8  ;;  %v1609_v15 = vld [vmem:[%s2715_s3] ss:$0 sm:$0xff]  ;;  %v1647_v27 = vld [vmem:[%s2716_s4 + $0x90] sm:$0xff] }
  0x17   : > { %1835 = vmatmul.mubr.msk.f32.vlgmr.msra.gmra.mrb[0].mxu1 %vm444_vm1, %v428_v18  ;;  %2098 = vmatprep.subr.bf16.mxu0 %v2097_v42  ;;  %v2077_v14 = vpack.c.bf16 %v654_v12, %v653_v11  ;;  %v1643_v20 = vld [vmem:[%s2717_s5 + $0x80] sm:$0xff]  ;;  %v1650_v36 = vld [vmem:[%s2716_s4 + $0xa8] sm:$0xff]  ;;  %v1662_v57 = vld [vmem:[%s2717_s5 + $0xb0] sm:$0xff] }
  0x18   : > { %2059 = vmatpush3.bf16.msra.mxu1 %v2058_v19  ;;  %1853 = vmatprep.mubr.msk.f32.mxu1 %vm2248_vm0, %v2249_v6  ;;  %v651_v6 = vld [vmem:[%s2717_s5 + $0x10] sm:$0xff]  ;;  %v1642_v19 = vld [vmem:[%s2717_s5 + $0x78] sm:$0xff]  ;;  %v657_v26 = vld [vmem:[%s2717_s5 + $0x40] sm:$0xff] }
  0x19   : > { %2060 = vmatprep.subr.bf16.mxu1 %v2247_v3  ;;  %v2073_v9 = vpack.c.bf16 %v652_v7, %v651_v6  ;;  %v2129_v21 = vpack.c.bf16 %v1643_v20, %v1642_v19  ;;  %v1653_v46 = vld [vmem:[%s2716_s4 + $0xc0] sm:$0xff]  ;;  %v1654_v47 = vld [vmem:[%s2716_s4 + $0xc8] sm:$0xff] }
  0x1a   : > { %2100 = vmatpush3.bf16.msra.mxu0 %v2097_v42  ;;  %v1651_v42 = vld [vmem:[%s2716_s4 + $0xb0] sm:$0xff]  ;;  %v2145_v48 = vpack.c.bf16 %v1654_v47, %v1653_v46  ;;  %v1661_v53 = vld [vmem:[%s2717_s5 + $0xa8] sm:$0xff]  ;;  %v1664_v61 = vld [vmem:[%s2717_s5 + $0xc0] sm:$0xff] }
  0x1b   : > { %1893 = vmatprep.subr.mxu0 %v646_v44  ;;  %v1665_v62 = vld [vmem:[%s2717_s5 + $0xc8] sm:$0xff]  ;;  %v1674_v6 = vld [vmem:[%s2720_s8 + $0x60] sm:$0xff]  ;;  %v1684_v47 = vld [vmem:[%s2720_s8 + $0x90] sm:$0xff] }
  0x1c   : > { %2062 = vmatpush3.bf16.msra.mxu1 %v2061_v22  ;;  %v655_v22 = vld [vmem:[%s2717_s5 + $0x30] sm:$0xff]  ;;  %v2161_v63 = vpack.c.bf16 %v1665_v62, %v1664_v61  ;;  %v1675_v8 = vld [vmem:[%s2720_s8 + $0x68] sm:$0xff]  ;;  %v1240_v46 = vld [vmem:[%s2720_s8 + $0x40] sm:$0xff] }
  0x1d   : > { %2063 = vmatprep.subr.bf16.mxu1 %v2247_v3  ;;  %v2081_v24 = vpack.c.bf16 %v656_v23, %v655_v22  ;;  %v1670_v22 = vld [vmem:[%s2719_s7] ss:$0 sm:$0xff]  ;;  %v1692_v61 = vld [vmem:[%s2720_s8 + $0xd0] sm:$0xff] }
  0x1e   : > { %1894 = vmatpush3.msra.mxu0 %v646_v44  ;;  %v1232_v23 = vld [vmem:[%s2720_s8] sm:$0xff] }
  0x1f   : > { %2102 = vmatprep.subr.bf16.mxu0 %v2101_v49 }
  0x20   : > { %2065 = vmatpush3.bf16.msra.mxu1 %v2064_v25  ;;  %v1644_v25 = vld [vmem:[%s2717_s5 + $0x88] sm:$0xff] }
  0x21   : > { %2066 = vmatprep.subr.bf16.mxu1 %v2247_v3  ;;  %v1639_v3 = vld [vmem:[%s2717_s5 + $0x60] sm:$0xff] }
  0x22   : > { %v2121_v5 = vpack.c.bf16 %v1639_v3, %v1638_v2  ;;  %v1671_v2 = vld [vmem:[%s2720_s8 + $0x48] sm:$0xff]  ;;  %v1672_v3 = vld [vmem:[%s2720_s8 + $0x50] sm:$0xff] }
  0x24   : > { %2068 = vmatpush3.bf16.msra.mxu1 %v2067_v28  ;;  %v1648_v28 = vld [vmem:[%s2716_s4 + $0x98] sm:$0xff] }
  0x25   : > { %2070 = vmatprep.subr.bf16.mxu1 %v2069_v4  ;;  %v2133_v29 = vpack.c.bf16 %v1648_v28, %v1647_v27 }
  0x27   : > { %1854 = vmatmul.mubr.msk.f32.vlgmr.msra.gmra.mrb[2].mxu1 %vm444_vm1, %v428_v18 }
  0x28   : > { %2072 = vmatpush3.bf16.msra.mxu1 %v2069_v4  ;;  %v1673_v4 = vld [vmem:[%s2720_s8 + $0x58] sm:$0xff] }
  0x29   : > { %2074 = vmatprep.subr.bf16.mxu1 %v2073_v9  ;;  %v2169_v7 = vpack.c.bf16 %v1674_v6, %v1673_v4 }
  0x2c   : > { %2076 = vmatpush3.bf16.msra.mxu1 %v2073_v9  ;;  %v1676_v9 = vld [vmem:[%s2720_s8 + $0x70] sm:$0xff] }
  0x2d   : > { %2078 = vmatprep.subr.bf16.mxu1 %v2077_v14  ;;  %v2173_v10 = vpack.c.bf16 %v1676_v9, %v1675_v8 }
  0x30   : > { %2080 = vmatpush3.bf16.msra.mxu1 %v2077_v14  ;;  %v1678_v14 = vld [vmem:[%s2720_s8 + $0x80] sm:$0xff] }
  0x31   : > { %2082 = vmatprep.subr.bf16.mxu1 %v2081_v24 }
  0x34   : > { %2084 = vmatpush3.bf16.msra.mxu1 %v2081_v24  ;;  %v1233_v24 = vld [vmem:[%s2720_s8 + $0x8] sm:$0xff] }
  0x35   : > { %1872 = vmatprep.subr.mxu1 %v657_v26 }
  0x38   : > { %1873 = vmatpush3.msra.mxu1 %v657_v26  ;;  %v2181_v26 = vpack.c.bf16 %v1233_v24, %v1232_v23 }
  0x83   : > { %v420_v35 = vpop.permute.xlu0 %419 }
  0x84   : > { %426 = vst.msk [vmem:[#allocation2 + $0x1] sm:$0xff] %vm425_vm3, %v420_v35  ;;  %v1649_v35 = vld [vmem:[%s2716_s4 + $0xa0] sm:$0xff] }
  0x85   : > { %v2137_v40 = vpack.c.bf16 %v1650_v36, %v1649_v35  ;;  %v1235_v35 = vld [vmem:[%s2720_s8 + $0x18] sm:$0xff] }
  0x87   : > { %v422_v39 = vpop.permute.xlu0 %421 }
  0x88   : > { %427 = vst.msk [vmem:[#allocation2 + $0x9] sm:$0xff] %vm425_vm3, %v422_v39 }
  0x8b   : > { %v636_v43 = vld [vmem:[#allocation2] sm:$0xff] }
  0x8c   : > { %1895 = vmatprep.mubr.msk.f32.mxu0 %vm404_vm2, %v636_v43  ;;  %v820_v52 = vld [vmem:[#allocation2 + $0x1] sm:$0xff]  ;;  %v1652_v43 = vld [vmem:[%s2716_s4 + $0xb8] sm:$0xff] }
  0x8d   : > { %v2141_v45 = vpack.c.bf16 %v1652_v43, %v1651_v42  ;;  %v1238_v43 = vld [vmem:[%s2720_s8 + $0x30] sm:$0xff] }
  0x8f   : > { %v637_v50 = vld [vmem:[#allocation2 + $0x8] sm:$0xff] }
  0x90   : > { %1896 = vmatmul.mubr.msk.f32.vlgmr.msra.gmra.mrb[0].mxu0 %vm404_vm2, %v637_v50  ;;  %v821_v60 = vld [vmem:[#allocation2 + $0x9] sm:$0xff] }
  0x91   : > { %2104 = vmatpush3.bf16.msra.mxu0 %v2101_v49  ;;  %1916 = vmatprep.mubr.msk.f32.mxu0 %vm404_vm2, %v820_v52  ;;  %v1010_v44 = vld [vmem:[#allocation2 + $0x2] sm:$0xff]  ;;  %v1655_v49 = vld [vmem:[%s2716_s4 + $0xd0] sm:$0xff] }
  0x92   : > { %2106 = vmatprep.subr.bf16.mxu0 %v2105_v51  ;;  %v1658_v50 = vld [vmem:[%s2717_s5 + $0x90] sm:$0xff]  ;;  %v1660_v52 = vld [vmem:[%s2717_s5 + $0xa0] sm:$0xff] }
  0x93   : > { %v1011_v56 = vld [vmem:[#allocation2 + $0xa] sm:$0xff] }
  0x95   : > { %2108 = vmatpush3.bf16.msra.mxu0 %v2105_v51  ;;  %v1659_v51 = vld [vmem:[%s2717_s5 + $0x98] sm:$0xff] }
  0x96   : > { %2110 = vmatprep.subr.bf16.mxu0 %v2109_v55  ;;  %v2149_v54 = vpack.c.bf16 %v1659_v51, %v1658_v50  ;;  %v1687_v50 = vld [vmem:[%s2720_s8 + $0xa8] sm:$0xff] }
  0x99   : > { %2112 = vmatpush3.bf16.msra.mxu0 %v2109_v55  ;;  %v2153_v55 = vpack.c.bf16 %v1661_v53, %v1660_v52 }
  0x9a   : > { %2114 = vmatprep.subr.bf16.mxu0 %v2113_v58 }
  0x9d   : > { %2116 = vmatpush3.bf16.msra.mxu0 %v2113_v58  ;;  %v1663_v58 = vld [vmem:[%s2717_s5 + $0xb8] sm:$0xff] }
  0x9e   : > { %1914 = vmatprep.subr.mxu0 %v1633_v59 }
  0xa1   : > { %1915 = vmatpush3.msra.mxu0 %v1633_v59 }
  0xa2   : > { %1917 = vmatmul.mubr.msk.f32.vlgmr.msra.gmra.mrb[0].mxu0 %vm404_vm2, %v821_v60  ;;  %2118 = vmatprep.subr.bf16.mxu0 %v2117_v0  ;;  %v2157_v60 = vpack.c.bf16 %v1663_v58, %v1662_v57  ;;  %v1690_v58 = vld [vmem:[%s2720_s8 + $0xc0] sm:$0xff] }
  0xa3   : > { %2120 = vmatpush3.bf16.msra.mxu0 %v2117_v0  ;;  %v1666_v0 = vld [vmem:[%s2717_s5 + $0xd0] sm:$0xff] }
  0xa4   : > { %2122 = vmatprep.subr.bf16.mxu0 %v2121_v5 }
  0xa7   : > { %2124 = vmatpush3.bf16.msra.mxu0 %v2121_v5  ;;  %v2165_v5 = vpack.c.bf16 %v1672_v3, %v1671_v2 }
  0xa8   : > { %2126 = vmatprep.subr.bf16.mxu0 %v2125_v13 }
  0xa9   : > { %2166 = vmatprep.subr.bf16.mxu1 %v2165_v5 }
  0xab   : > { %2128 = vmatpush3.bf16.msra.mxu0 %v2125_v13  ;;  %v1677_v13 = vld [vmem:[%s2720_s8 + $0x78] sm:$0xff] }
  0xac   : > { %2130 = vmatprep.subr.bf16.mxu0 %v2129_v21 }
  0xaf   : > { %2132 = vmatpush3.bf16.msra.mxu0 %v2129_v21 }
  0xb0   : > { %1935 = vmatprep.subr.mxu0 %v1644_v25 }
  0xb3   : > { %1936 = vmatpush3.msra.mxu0 %v1644_v25 }
  0xb4   : > { %2134 = vmatprep.subr.bf16.mxu0 %v2133_v29 }
  0xea   : > { %v514_v16 = vpop.f32.mrb[0].mxu1 }
  0xeb   : > { %v515_v17 = vadd.f32 %v1609_v15, %v514_v16  ;;  %v1836_v18 = vpop.f32.mrb[1].mxu1  ;;  %v1679_v16 = vld [vmem:[%s2720_s8 + $0x88] sm:$0xff] }
  0xec   : > { %v1669_v18 = vld [vmem:[%s2718_s6] ss:$0 sm:$0xff] }
  0xed   : > { %519 = vrot.lane.b32.xlu1 %v515_v17, %s2250_s22 }
  0xfa   : > { %v620_v30 = vpop.f32.mrb[2].mxu1 }
  0xfb   : > { %v621_v31 = vadd.f32 %v1609_v15, %v620_v30  ;;  %v1855_v32 = vpop.f32.mrb[3].mxu1  ;;  %v2177_v15 = vpack.c.bf16 %v1678_v14, %v1677_v13 }
  0xfd   : > { %625 = vrot.lane.b32.xlu1 %v621_v31, %s2250_s22 }
 0x15f   : > { %v520_v33 = vpop.permute.xlu1 %519 }
 0x160   : > { %523 = vst.msk [vmem:[#allocation3 + $0x1] sm:$0x1] %vm522_vm5, %v520_v33 }
 0x161   : > { %525 = vst.msk [vmem:[#allocation3 + $0x2] sm:$0x2] %vm524_vm6, %v520_v33 }
 0x162   : > { %527 = vst.msk [vmem:[#allocation3 + $0x3] sm:$0x4] %vm526_vm7, %v520_v33 }
 0x163   : > { %529 = vst.msk [vmem:[#allocation3 + $0x4] sm:$0x8] %vm528_vm8, %v520_v33 }
 0x164   : > { %531 = vst.msk [vmem:[#allocation3 + $0x5] sm:$0x10] %vm530_vm9, %v520_v33 }
 0x165   : > { %533 = vst.msk [vmem:[#allocation3 + $0x6] sm:$0x20] %vm532_vm10, %v520_v33 }
 0x166   : > { %535 = vst.msk [vmem:[#allocation3 + $0x7] sm:$0x40] %vm534_vm11, %v520_v33 }
 0x167   : > { %537 = vst.msk [vmem:[#allocation3 + $0x8] sm:$0x80] %vm536_vm12, %v520_v33 }
 0x16f   : > { %v626_v34 = vpop.permute.xlu1 %625 }
 0x170   : > { %628 = vst.msk [vmem:[#allocation3 + $0x2] sm:$0x1] %vm522_vm5, %v626_v34 }
 0x171   : > { %629 = vst.msk [vmem:[#allocation3 + $0x3] sm:$0x2] %vm524_vm6, %v626_v34 }
 0x172   : > { %630 = vst.msk [vmem:[#allocation3 + $0x4] sm:$0x4] %vm526_vm7, %v626_v34 }
 0x173   : > { %631 = vst.msk [vmem:[#allocation3 + $0x5] sm:$0x8] %vm528_vm8, %v626_v34 }
 0x174   : > { %632 = vst.msk [vmem:[#allocation3 + $0x6] sm:$0x10] %vm530_vm9, %v626_v34 }
 0x175   : > { %633 = vst.msk [vmem:[#allocation3 + $0x7] sm:$0x20] %vm532_vm10, %v626_v34 }
 0x176   : > { %634 = vst.msk [vmem:[#allocation3 + $0x8] sm:$0x40] %vm534_vm11, %v626_v34 }
 0x177   : > { %635 = vst.msk [vmem:[#allocation3 + $0x9] sm:$0x80] %vm536_vm12, %v626_v34  ;;  %v1234_v34 = vld [vmem:[%s2720_s8 + $0x10] sm:$0xff] }
 0x179   : > { %v647_v37 = vld [vmem:[#allocation3] sm:$0xff] }
 0x17a   : > { %v915_v38 = vld [vmem:[#allocation3 + $0x1] sm:$0xff]  ;;  %1874 = vmatprep.mubr.msk.f32.mxu1 %vm404_vm2, %v647_v37  ;;  %v2185_v37 = vpack.c.bf16 %v1235_v35, %v1234_v34 }
 0x17b   : > { %1937 = vmatprep.mubr.msk.f32.mxu0 %vm404_vm2, %v915_v38  ;;  %v1105_v59 = vld [vmem:[#allocation3 + $0x2] sm:$0xff] }
 0x17d   : > { %v648_v39 = vld [vmem:[#allocation3 + $0x8] sm:$0xff] }
 0x17e   : > { %v916_v41 = vld [vmem:[#allocation3 + $0x9] sm:$0xff]  ;;  %1875 = vmatmul.mubr.msk.f32.vlgmr.msra.gmra.mrb[4].mxu1 %vm404_vm2, %v648_v39 }
 0x17f   : > { %1938 = vmatmul.mubr.msk.f32.vlgmr.msra.gmra.mrb[0].mxu0 %vm404_vm2, %v916_v41  ;;  %v1106_v1 = vld [vmem:[#allocation3 + $0xa] sm:$0xff]  ;;  %2168 = vmatpush3.bf16.msra.mxu1 %v2165_v5 }
 0x180   : > { %2136 = vmatpush3.bf16.msra.mxu0 %v2133_v29  ;;  %1958 = vmatprep.mubr.msk.f32.mxu0 %vm404_vm2, %v1010_v44  ;;  %v1236_v39 = vld [vmem:[%s2720_s8 + $0x20] sm:$0xff]  ;;  %v1239_v44 = vld [vmem:[%s2720_s8 + $0x38] sm:$0xff] }
 0x181   : > { %2138 = vmatprep.subr.bf16.mxu0 %v2137_v40  ;;  %2170 = vmatprep.subr.bf16.mxu1 %v2169_v7 }
 0x183   : > { %2172 = vmatpush3.bf16.msra.mxu1 %v2169_v7 }
 0x184   : > { %2140 = vmatpush3.bf16.msra.mxu0 %v2137_v40  ;;  %2174 = vmatprep.subr.bf16.mxu1 %v2173_v10  ;;  %v1237_v40 = vld [vmem:[%s2720_s8 + $0x28] sm:$0xff] }
 0x185   : > { %2142 = vmatprep.subr.bf16.mxu0 %v2141_v45  ;;  %v2189_v42 = vpack.c.bf16 %v1237_v40, %v1236_v39 }
 0x187   : > { %2176 = vmatpush3.bf16.msra.mxu1 %v2173_v10 }
 0x188   : > { %2144 = vmatpush3.bf16.msra.mxu0 %v2141_v45  ;;  %2178 = vmatprep.subr.bf16.mxu1 %v2177_v15  ;;  %v2193_v45 = vpack.c.bf16 %v1239_v44, %v1238_v43 }
 0x189   : > { %2146 = vmatprep.subr.bf16.mxu0 %v2145_v48 }
 0x18b   : > { %2180 = vmatpush3.bf16.msra.mxu1 %v2177_v15 }
 0x18c   : > { %2148 = vmatpush3.bf16.msra.mxu0 %v2145_v48  ;;  %1998 = vmatprep.subr.mxu1 %v1679_v16  ;;  %v1685_v48 = vld [vmem:[%s2720_s8 + $0x98] sm:$0xff] }
 0x18d   : > { %1956 = vmatprep.subr.mxu0 %v1655_v49  ;;  %v2197_v51 = vpack.c.bf16 %v1685_v48, %v1684_v47 }
 0x18f   : > { %1999 = vmatpush3.msra.mxu1 %v1679_v16 }
 0x190   : > { %1957 = vmatpush3.msra.mxu0 %v1655_v49  ;;  %2182 = vmatprep.subr.bf16.mxu1 %v2181_v26  ;;  %v1686_v49 = vld [vmem:[%s2720_s8 + $0xa0] sm:$0xff] }
 0x191   : > { %1959 = vmatmul.mubr.msk.f32.vlgmr.msra.gmra.mrb[0].mxu0 %vm404_vm2, %v1011_v56  ;;  %2150 = vmatprep.subr.bf16.mxu0 %v2149_v54  ;;  %v2201_v52 = vpack.c.bf16 %v1687_v50, %v1686_v49 }
 0x192   : > { %2152 = vmatpush3.bf16.msra.mxu0 %v2149_v54  ;;  %1979 = vmatprep.mubr.msk.f32.mxu0 %vm404_vm2, %v1105_v59  ;;  %v1688_v54 = vld [vmem:[%s2720_s8 + $0xb0] sm:$0xff]  ;;  %v1691_v59 = vld [vmem:[%s2720_s8 + $0xc8] sm:$0xff] }
 0x193   : > { %2154 = vmatprep.subr.bf16.mxu0 %v2153_v55 }
 0x196   : > { %2156 = vmatpush3.bf16.msra.mxu0 %v2153_v55  ;;  %v1689_v55 = vld [vmem:[%s2720_s8 + $0xb8] sm:$0xff] }
 0x197   : > { %2158 = vmatprep.subr.bf16.mxu0 %v2157_v60  ;;  %v2205_v57 = vpack.c.bf16 %v1689_v55, %v1688_v54 }
 0x19a   : > { %2160 = vmatpush3.bf16.msra.mxu0 %v2157_v60  ;;  %v2209_v60 = vpack.c.bf16 %v1691_v59, %v1690_v58 }
 0x19b   : > { %2162 = vmatprep.subr.bf16.mxu0 %v2161_v63 }
 0x19e   : > { %2164 = vmatpush3.bf16.msra.mxu0 %v2161_v63  ;;  %v1695_v63 = vld [vmem:[%s2721_s9] ss:$0 sm:$0xff] }
 0x19f   : > { %1977 = vmatprep.subr.mxu0 %v1666_v0 }
 0x1a2   : > { %1978 = vmatpush3.msra.mxu0 %v1666_v0 }
 0x1a3   : > { %1980 = vmatmul.mubr.msk.f32.vlgmr.msra.gmra.mrb[0].mxu0 %vm404_vm2, %v1106_v1  ;;  %v1696_v1 = vld [vmem:[%s2722_s10] ss:$0 sm:$0xff] }
 0x251   : > { %v1876_v11 = vpop.f32.mrb[4].mxu1 }
 0x252   : > { %v730_v12 = vpop.f32.mrb[5].mxu1 }
 0x276   : > { %v1981_v17 = vpop.f32.mrb[0].mxu0 }
 0x277   : > { %v2213_v19 = vadd.f32 %v1981_v17, %v1876_v11  ;;  %v1189_v20 = vpop.f32.mrb[1].mxu0 }
 0x278   : > { %v2214_v21 = vadd.f32 %v1189_v20, %v730_v12 }
 0x279   : > { %v1208_v25 = vmul.f32 %v2213_v19, %v1669_v18 }
 0x27a   : > { %v1207_v27 = vmul.f32 %v2214_v21, %v1669_v18 }
 0x27b   : > { %v1217_v28 = vadd.f32 %v1670_v22, %v1208_v25 }
 0x27c   : > { %v1216_v29 = vadd.f32 %v1670_v22, %v1207_v27 }
 0x27d   : > { %v1219_v30 = vmax.f32 %v1217_v28, 0.0 }
 0x27e   : > { %v1218_v31 = vmax.f32 %v1216_v29, 0.0 }
 0x27f   : > { %1224 = vrot.lane.b32.xlu1 %v1219_v30, %s2250_s22 }
 0x280   : > { %1222 = vrot.lane.b32.xlu0 %v1218_v31, %s2250_s22 }
 0x2f1   : > { %v1225_v32 = vpop.permute.xlu1 %1224 }
 0x2f2   : > { %1229 = vst.msk [vmem:[#allocation4 + $0x9] sm:$0xff] %vm425_vm3, %v1225_v32  ;;  %v1223_v33 = vpop.permute.xlu0 %1222 }
 0x2f3   : > { %1228 = vst.msk [vmem:[#allocation4 + $0x1] sm:$0xff] %vm425_vm3, %v1223_v33 }
 0x2f9   : > { %v1242_v38 = vld [vmem:[#allocation4 + $0x9] sm:$0xff] }
 0x2fa   : > { %v1241_v36 = vld [vmem:[#allocation4 + $0x1] sm:$0xff]  ;;  %v1416_v62 = vld [vmem:[#allocation4 + $0xa] sm:$0xff] }
 0x2fb   : > { %2000 = vmatprep.mubr.msk.f32.mxu1 %vm404_vm2, %v1241_v36  ;;  %v1230_v41 = vld [vmem:[#allocation4] sm:$0xff]  ;;  %v1231_v53 = vld [vmem:[#allocation4 + $0x8] sm:$0xff] }
 0x2fc   : > { %2001 = vmatmul.mubr.msk.f32.vlgmr.msra.gmra.mrb[6].mxu1 %vm404_vm2, %v1242_v38  ;;  %v1415_v56 = vld [vmem:[#allocation4 + $0x2] sm:$0xff] }
 0x2fd   : > { %2184 = vmatpush3.bf16.msra.mxu1 %v2181_v26  ;;  %2021 = vmatprep.mubr.msk.f32.mxu1 %vm404_vm2, %v1230_v41 }
 0x2fe   : > { %2186 = vmatprep.subr.bf16.mxu1 %v2185_v37 }
 0x301   : > { %2188 = vmatpush3.bf16.msra.mxu1 %v2185_v37 }
 0x302   : > { %2190 = vmatprep.subr.bf16.mxu1 %v2189_v42 }
 0x305   : > { %2192 = vmatpush3.bf16.msra.mxu1 %v2189_v42 }
 0x306   : > { %2194 = vmatprep.subr.bf16.mxu1 %v2193_v45 }
 0x309   : > { %2196 = vmatpush3.bf16.msra.mxu1 %v2193_v45 }
 0x30a   : > { %2019 = vmatprep.subr.mxu1 %v1240_v46 }
 0x30d   : > { %2020 = vmatpush3.msra.mxu1 %v1240_v46 }
 0x30e   : > { %2022 = vmatmul.mubr.msk.f32.vlgmr.msra.gmra.mrb[6].mxu1 %vm404_vm2, %v1231_v53  ;;  %2198 = vmatprep.subr.bf16.mxu1 %v2197_v51 }
 0x30f   : > { %2200 = vmatpush3.bf16.msra.mxu1 %v2197_v51  ;;  %2042 = vmatprep.mubr.msk.f32.mxu1 %vm404_vm2, %v1415_v56 }
 0x310   : > { %2202 = vmatprep.subr.bf16.mxu1 %v2201_v52 }
 0x313   : > { %2204 = vmatpush3.bf16.msra.mxu1 %v2201_v52 }
 0x314   : > { %2206 = vmatprep.subr.bf16.mxu1 %v2205_v57 }
 0x317   : > { %2208 = vmatpush3.bf16.msra.mxu1 %v2205_v57 }
 0x318   : > { %2210 = vmatprep.subr.bf16.mxu1 %v2209_v60 }
 0x31b   : > { %2212 = vmatpush3.bf16.msra.mxu1 %v2209_v60 }
 0x31c   : > { %2040 = vmatprep.subr.mxu1 %v1692_v61 }
 0x31f   : > { %2041 = vmatpush3.msra.mxu1 %v1692_v61 }
 0x320   : > { %2043 = vmatmul.mubr.msk.f32.vlgmr.msra.gmra.mrb[6].mxu1 %vm404_vm2, %v1416_v62 }
 0x3f3   : > { %v2044_v0 = vpop.f32.mrb[6].mxu1 }
 0x3f4   : > { %v1518_v2 = vmul.f32 %v2044_v0, %v1695_v63  ;;  %v1499_v3 = vpop.f32.mrb[7].mxu1 }
 0x3f5   : > { %v1517_v4 = vmul.f32 %v1695_v63, %v1499_v3 }
 0x3f6   : > { %v1527_v5 = vadd.f32 %v1696_v1, %v1518_v2 }
 0x3f7   : > { %v1526_v6 = vadd.f32 %v1696_v1, %v1517_v4 }
 0x3f8   : > { %v1529_v7 = vmax.f32 %v1527_v5, 0.0 }
 0x3f9   : > { %v1528_v8 = vmax.f32 %v1526_v6, 0.0 }
 0x3fa   : > { %1531 = vst.msk [vmem:[%s403_s16 + $0x8] sm:$0xff] %vm444_vm1, %v1529_v7 }
 0x3fb   : > { %1530 = vst.msk [vmem:[%s403_s16] sm:$0xff] %vm444_vm1, %v1528_v8 }
 0x3fc PF: > { %s21_s17 = sadd.s32 1, %s2245_s17  }
 0x3fd   : > { %p18_p4 = scmp.ge.s32.totalorder %s21_s17, 4  }
 0x3ff   :  { %20 = sbr.rel (!%p18_p4) target bundleno = 1 (0x1), region = 104 }

</bundles_post_ra>
